<compile_context>
chip_gen: v7x
topology: tpu7x:2x2x1
jax: 0.10.0
libtpu: 0.0.40
codegen_flags: <defaults>
</compile_context>

<pallas_src>
import functools

import jax
import jax.numpy as jnp
from jax.experimental import pallas as pl
from jax.experimental.pallas import tpu as pltpu


# ------------------------------ small helpers -------------------------------

def _round_up(x, m):
    return ((x + m - 1) // m) * m


def _vmem_limit(block_bytes):
    """Scoped-VMEM request derived from actual block bytes, capped for v7x."""
    lim = int(block_bytes * 2.5) + (4 << 20)
    return max(16 << 20, min(lim, 40 << 20))


def _choose_m_tile(Mp, Cp, Kp, budget=32 << 20, max_tile=2048):
    """Largest lane-multiple M tile dividing Mp that fits a VMEM budget."""
    def fits(t):
        # resident weight + double-buffered B block + double-buffered output
        return (2 * Cp * Kp * 2 + 2 * Kp * t * 2 + 2 * Cp * t * 4) <= budget

    best = 128
    t = 128
    while t <= min(Mp, max_tile):
        if Mp % t == 0 and fits(t):
            best = t
        t += 128
    # v7x megacore: keep >= 2 M tiles when a single block would cover all of M
    # so both TensorCores get work on the "parallel" axis.
    if best == Mp and Mp >= 256 and (Mp // 2) % 128 == 0:
        best = Mp // 2
    return best


def _pick_row_tile(R, L, n_arrays, budget=24 << 20):
    """Row tile for (R, L) slabs, derived from a per-block VMEM budget."""
    per_row = n_arrays * L * 4 * 2          # fp32, double-buffered
    max_tr = max(8, budget // max(per_row, 1))
    best = 0
    t = 8
    while t <= min(R, max_tr, 1024):
        if R % t == 0:
            best = t
        t += 8
    if best == 0:
        best = R  # full block is always legal
        # TODO(synk): at very large H*W add an L grid axis with partial stats.
    return best


# --------------------------- Pallas GEMM (fused) ----------------------------

def _gemm_bias_act_kernel(a_ref, b_ref, bias_ref, o_ref, *, activation):
    """O(Cp, tm) = A(Cp, Kp) @ B(Kp, tm) ; epilogue: +bias, activation.

    Single full-K block: no reduction axis, no accumulator scratch."""
    y = jnp.dot(a_ref[...], b_ref[...], preferred_element_type=jnp.float32)
    y = y + bias_ref[...]                    # (Cp, 1) broadcasts over lanes
    if activation == "relu":
        y = jnp.maximum(y, 0.0)
    elif activation == "tanh":
        y = jnp.tanh(y)
    o_ref[...] = y


def matmul_fused(wm, b2, patches, cout, activation="none"):
    """wm: (Cp, Kp) bf16 pre-padded weight; b2: (Cp, 1) f32 pre-padded bias;
    patches: (K, M) bf16 im2col matrix.  Returns (cout, M) f32."""
    Cp, Kp = wm.shape
    K, M = patches.shape
    Mp = _round_up(M, 128)
    b = jnp.pad(patches, ((0, Kp - K), (0, Mp - M)))
    tm = _choose_m_tile(Mp, Cp, Kp)

    block_bytes = Cp * Kp * 2 + Kp * tm * 2 + Cp * tm * 4 + Cp * 4
    cost = pl.CostEstimate(
        flops=2 * Cp * Kp * Mp,
        transcendentals=(Cp * Mp) if activation == "tanh" else 0,
        bytes_accessed=Cp * Kp * 2 + Kp * Mp * 2 + Cp * Mp * 4,
    )

    out = pl.pallas_call(
        functools.partial(_gemm_bias_act_kernel, activation=activation),
        out_shape=jax.ShapeDtypeStruct((Cp, Mp), jnp.float32),
        grid_spec=pltpu.PrefetchScalarGridSpec(
            num_scalar_prefetch=0,
            grid=(Mp // tm,),                              # 1-D grid over M
            in_specs=[
                pl.BlockSpec((Cp, Kp), lambda m: (0, 0)),  # weight, VMEM-resident
                pl.BlockSpec((Kp, tm), lambda m: (0, m)),
                pl.BlockSpec((Cp, 1), lambda m: (0, 0)),
            ],
            out_specs=pl.BlockSpec((Cp, tm), lambda m: (0, m)),
        ),
        compiler_params=pltpu.CompilerParams(
            dimension_semantics=("parallel",),
            vmem_limit_bytes=_vmem_limit(block_bytes),
        ),
        cost_estimate=cost,
    )(wm, b, b2)
    return out[:cout, :M]


# ---------------- Pallas InstanceNorm (+ReLU, + optional residual) ----------

def _in_kernel(x_ref, o_ref, *, relu):
    x = x_ref[...]
    inv_l = 1.0 / x.shape[-1]
    mean = jnp.sum(x, axis=-1, keepdims=True) * inv_l
    d = x - mean
    var = jnp.sum(d * d, axis=-1, keepdims=True) * inv_l   # shifted two-pass
    y = d * jax.lax.rsqrt(var + 1e-5)                       # InstanceNorm2d, affine=False
    if relu:
        y = jnp.maximum(y, 0.0)
    o_ref[...] = y


def _in_res_kernel(x_ref, r_ref, o_ref, *, relu):
    x = x_ref[...]
    inv_l = 1.0 / x.shape[-1]
    mean = jnp.sum(x, axis=-1, keepdims=True) * inv_l
    d = x - mean
    var = jnp.sum(d * d, axis=-1, keepdims=True) * inv_l
    y = d * jax.lax.rsqrt(var + 1e-5)
    if relu:
        y = jnp.maximum(y, 0.0)
    o_ref[...] = y + r_ref[...]                              # fused residual add


def instance_norm(x, relu=False, residual=None):
    N, C, H, W = x.shape
    R, L = N * C, H * W
    xr = x.reshape(R, L)
    n_arrays = 2 if residual is None else 3
    tr = _pick_row_tile(R, L, n_arrays)
    row_spec = pl.BlockSpec((tr, L), lambda r: (r, 0))
    cparams = pltpu.CompilerParams(
        dimension_semantics=("parallel",),
        vmem_limit_bytes=_vmem_limit(n_arrays * tr * L * 4),
    )
    if residual is None:
        out = pl.pallas_call(
            functools.partial(_in_kernel, relu=relu),
            out_shape=jax.ShapeDtypeStruct((R, L), jnp.float32),
            grid_spec=pltpu.PrefetchScalarGridSpec(
                num_scalar_prefetch=0, grid=(R // tr,),
                in_specs=[row_spec], out_specs=row_spec),
            compiler_params=cparams,
        )(xr)
    else:
        out = pl.pallas_call(
            functools.partial(_in_res_kernel, relu=relu),
            out_shape=jax.ShapeDtypeStruct((R, L), jnp.float32),
            grid_spec=pltpu.PrefetchScalarGridSpec(
                num_scalar_prefetch=0, grid=(R // tr,),
                in_specs=[row_spec, row_spec], out_specs=row_spec),
            compiler_params=cparams,
        )(xr, residual.reshape(R, L))
    return out.reshape(N, C, H, W)


# ------------------------------ conv glue (JAX) ------------------------------

def reflect_pad(x, p):
    return jnp.pad(x, ((0, 0), (0, 0), (p, p), (p, p)), mode="reflect")


def zero_pad(x, p):
    return jnp.pad(x, ((0, 0), (0, 0), (p, p), (p, p)))


def _extract_patches_bf16(x, kh, kw, stride):
    """x (already padded): (N, Cin, H, W) -> (Cin*kh*kw, N*Ho*Wo) bf16."""
    x = x.astype(jnp.bfloat16)
    N, Cin, H, W = x.shape
    Ho = (H - kh) // stride + 1
    Wo = (W - kw) // stride + 1
    cols = []
    for i in range(kh):
        for j in range(kw):
            cols.append(
                x[:, :, i:i + Ho * stride:stride, j:j + Wo * stride:stride])
    patches = jnp.stack(cols, axis=0).reshape(kh, kw, N, Cin, Ho, Wo)
    patches = patches.transpose(3, 0, 1, 2, 4, 5).reshape(
        Cin * kh * kw, N * Ho * Wo)
    return patches, N, Ho, Wo


def _conv2d_raw(x, wm, b2, meta, stride=1, activation="none"):
    """Conv with pre-padded bf16 weight matrix; returns (Cout, N, Ho, Wo)."""
    cout, cin, kh, kw = meta
    patches, N, Ho, Wo = _extract_patches_bf16(x, kh, kw, stride)
    out = matmul_fused(wm, b2, patches, cout, activation=activation)  # (Cout, M)
    return out.reshape(cout, N, Ho, Wo)


def conv2d(x, wm, b2, meta, stride=1, activation="none"):
    return _conv2d_raw(x, wm, b2, meta, stride, activation).transpose(1, 0, 2, 3)


def conv_transpose2d(x, wm_all, b2_all, meta):
    """PyTorch ConvTranspose2d(k=3, stride=2, padding=1, output_padding=1) via
    its 4 sub-pixel phases evaluated as one GEMM with 4*Cout output channels;
    the phase interleave is a single transpose+reshape on the raw output."""
    cout4, cin, kh, kw = meta
    cout = cout4 // 4
    N, C, H, W = x.shape
    assert C == cin and kh == 2 and kw == 2
    x_p = jnp.pad(x, ((0, 0), (0, 0), (0, 1), (0, 1)))     # bottom/right zero pad
    y = _conv2d_raw(x_p, wm_all, b2_all, meta)              # (4*Cout, N, H, W)
    y = y.reshape(2, 2, cout, N, H, W)                      # (ph, pw, c, n, h, w)
    y = y.transpose(3, 2, 4, 0, 5, 1)                       # (n, c, h, ph, w, pw)
    return y.reshape(N, cout, 2 * H, 2 * W)


# --------------------------- weight pre-processing ---------------------------

def _prep_conv(w, b):
    """w: (Cout, Cin, kh, kw) fp32 -> padded bf16 (Cp, Kp) weight matrix."""
    cout, cin, kh, kw = w.shape
    K = cin * kh * kw
    Cp = _round_up(cout, 16)             # full bf16 sublane packing
    Kp = _round_up(K, 128)
    wm = jnp.pad(w.reshape(cout, K),
                 ((0, Cp - cout), (0, Kp - K))).astype(jnp.bfloat16)
    b2 = jnp.pad(b.reshape(cout, 1).astype(jnp.float32), ((0, Cp - cout), (0, 0)))
    return wm, b2, (cout, cin, kh, kw)


def _prep_conv_transpose(w, b):
    """w: (Cin, Cout, 3, 3) PyTorch ConvTranspose layout -> 4-phase 2x2 conv."""
    cin, cout, kh, kw = w.shape
    assert kh == 3 and kw == 3
    wf = jnp.flip(w, axis=(2, 3)).transpose(1, 0, 2, 3)          # (Cout, Cin, 3, 3)
    wf_p = jnp.pad(wf, ((0, 0), (0, 0), (0, 1), (0, 1)))         # (Cout, Cin, 4, 4)
    phase_kernels = [wf_p[:, :, 1 - ph::2, 1 - pw::2]
                     for ph in (0, 1) for pw in (0, 1)]          # each (Cout,Cin,2,2)
    w_all = jnp.concatenate(phase_kernels, axis=0)               # (4*Cout, Cin, 2, 2)
    b_all = jnp.concatenate([b, b, b, b], axis=0)
    return _prep_conv(w_all, b_all)


# ------------------------------- forward pass --------------------------------

def _forward_impl(p, img, *, meta, n_downsampling, n_blocks):
    def conv(name, x, stride=1, activation="none"):
        return conv2d(x, p[name + "_wm"], p[name + "_b2"], meta[name],
                      stride=stride, activation=activation)

    def deconv(name, x):
        return conv_transpose2d(x, p[name + "_wm"], p[name + "_b2"], meta[name])

    # ---- ctx encoder (forward_encoder) ----
    x = reflect_pad(img, 3)
    x = conv("ctx_in", x)
    x = instance_norm(x, relu=True)
    for i in range(n_downsampling):
        x = zero_pad(x, 1)
        x = conv(f"down{i}", x, stride=2)
        x = instance_norm(x, relu=True)
    # ---- embedder (which_stream == 'ctx': combined_feat = ctx_feat) ----
    feat = x
    for i in range(n_blocks):
        y = reflect_pad(feat, 1)
        y = conv(f"res{i}a", y)
        y = instance_norm(y, relu=True)
        y = reflect_pad(y, 1)
        y = conv(f"res{i}b", y)
        feat = instance_norm(y, relu=False, residual=feat)   # fused residual add
    # ---- decoder ----
    x = feat
    for i in range(n_downsampling):
        x = deconv(f"up{i}", x)
        x = instance_norm(x, relu=True)
    # ---- output embedder: ReflectionPad(3) + Conv 7x7 + Tanh (fused) ----
    x = reflect_pad(x, 3)
    x = conv("out", x, activation="tanh")
    return x


class GlobalTwoStreamGeneratorPallas:
    def __init__(self, input_nc, output_nc, ngf=8, n_downsampling=2, n_blocks=2,
                 which_stream="ctx", feat_fusion="early_add", extra_embed=False,
                 key=None):
        assert which_stream == "ctx" and "early" in feat_fusion, \
            "only the default 'ctx' / early-fusion path is implemented"
        self.ngf = ngf
        self.n_downsampling = n_downsampling
        self.n_blocks = n_blocks
        self.output_nc = output_nc
        feat_dim = ngf * 2 ** n_downsampling
        self.feat_dim = feat_dim
        ctx_dim = 3 if not extra_embed else 6

        def draw(k, shape, scale=0.05):
            return scale * jax.random.normal(k, shape, dtype=jnp.float32)

        keys = iter(jax.random.split(key, 64))
        p, meta = {}, {}

        def add_conv(name, w, b):
            wm, b2, m = _prep_conv(w, b)
            p[name + "_wm"], p[name + "_b2"], meta[name] = wm, b2, m

        def add_deconv(name, w, b):
            wm, b2, m = _prep_conv_transpose(w, b)
            p[name + "_wm"], p[name + "_b2"], meta[name] = wm, b2, m

        # ctx input embedder: ReflectionPad(3) + Conv 7x7 + IN + ReLU
        add_conv("ctx_in", draw(next(keys), (ngf, ctx_dim, 7, 7)),
                 draw(next(keys), (ngf,)))
        # ctx downsampler
        for i in range(n_downsampling):
            mult = 2 ** i
            add_conv(f"down{i}",
                     draw(next(keys), (ngf * mult * 2, ngf * mult, 3, 3)),
                     draw(next(keys), (ngf * mult * 2,)))
        # latent embedder: n_blocks ResnetBlocks
        for i in range(n_blocks):
            add_conv(f"res{i}a", draw(next(keys), (feat_dim, feat_dim, 3, 3)),
                     draw(next(keys), (feat_dim,)))
            add_conv(f"res{i}b", draw(next(keys), (feat_dim, feat_dim, 3, 3)),
                     draw(next(keys), (feat_dim,)))
        # decoder: ConvTranspose2d (PyTorch weight layout (Cin, Cout, 3, 3))
        for i in range(n_downsampling):
            mult = 2 ** (n_downsampling - i)
            dim_in, dim_out = ngf * mult, (ngf * mult) // 2
            add_deconv(f"up{i}", draw(next(keys), (dim_in, dim_out, 3, 3)),
                       draw(next(keys), (dim_out,)))
        # output embedder: ReflectionPad(3) + Conv 7x7 + Tanh
        add_conv("out", draw(next(keys), (output_nc, ngf, 7, 7)),
                 draw(next(keys), (output_nc,)))

        self.p = p
        self.meta = meta
        self._jit_forward = jax.jit(functools.partial(
            _forward_impl, meta=meta,
            n_downsampling=n_downsampling, n_blocks=n_blocks))

    def forward(self, img, label, mask):
        # NOTE: `label` and `mask` are unused on the default 'ctx'/'early_add'
        # path (matches the PyTorch module's default forward).
        del label, mask
        return self._jit_forward(self.p, img)


# ---------------------------------- main -------------------------------------

if __name__ == "__main__":
    key = jax.random.PRNGKey(0)
    k_img, k_lbl, k_msk, k_par = jax.random.split(key, 4)

    B, H, W = 2, 16, 16
    input_nc, output_nc = 4, 3
    img = jax.random.normal(k_img, (B, 3, H, W), dtype=jnp.float32)
    label = jax.random.normal(k_lbl, (B, input_nc, H, W), dtype=jnp.float32)
    mask = (jax.random.uniform(k_msk, (B, 1, H, W)) > 0.5).astype(jnp.float32)

    model = GlobalTwoStreamGeneratorPallas(
        input_nc=input_nc, output_nc=output_nc,
        ngf=8, n_downsampling=2, n_blocks=2,
        which_stream="ctx", feat_fusion="early_add", key=k_par,
    )

    out = model.forward(img, label, mask)
    out = jax.block_until_ready(out)
    assert out.shape == (B, output_nc, H, W), out.shape
    assert bool(jnp.all(jnp.isfinite(out)))
    print("KERNEL_OK")
</pallas_src>

<mosaic_0001>
module attributes {stable_mosaic.version = 11 : i64} {
  func.func @_gemm_bias_act_kernel(%arg0: i32, %arg1: memref<16x256xbf16, #tpu.memory_space<vmem>>, %arg2: memref<256x256xbf16, #tpu.memory_space<vmem>>, %arg3: memref<16x1xf32, #tpu.memory_space<vmem>>, %arg4: memref<16x256xf32, #tpu.memory_space<vmem>>) attributes {dimension_semantics = [#tpu.dimension_semantics<parallel>], iteration_bounds = array<i64: 2>, scalar_prefetch = 0 : i64, scratch_operands = 0 : i64, tpu.core_type = #tpu.core_type<tc>, window_params = [{pipeline_mode = #tpu.pipeline_mode<synchronous>, transform_indices = @transform_0, window_bounds = array<i64: 16, 256>}, {transform_indices = @transform_1, window_bounds = array<i64: 256, 256>}, {pipeline_mode = #tpu.pipeline_mode<synchronous>, transform_indices = @transform_2, window_bounds = array<i64: 16, 1>}, {transform_indices = @transform_3, window_bounds = array<i64: 16, 256>}]} {
    %c0 = arith.constant 0 : index
    %c0_0 = arith.constant 0 : index
    %0 = vector.load %arg1[%c0, %c0_0] : memref<16x256xbf16, #tpu.memory_space<vmem>>, vector<16x256xbf16>
    %c0_1 = arith.constant 0 : index
    %c0_2 = arith.constant 0 : index
    %1 = vector.load %arg2[%c0_1, %c0_2] : memref<256x256xbf16, #tpu.memory_space<vmem>>, vector<256x256xbf16>
    %cst = arith.constant dense<0.000000e+00> : vector<16x256xf32>
    %2 = tpu.matmul %0, %1, %cst {dimension_numbers = #tpu.dot_dimension_numbers<[1], [0], [0], [1], [0, 0, 1, 1], [], []>} : vector<16x256xbf16>, vector<256x256xbf16>, vector<16x256xf32> -> vector<16x256xf32>
    %c0_3 = arith.constant 0 : index
    %c0_4 = arith.constant 0 : index
    %3 = vector.load %arg3[%c0_3, %c0_4] : memref<16x1xf32, #tpu.memory_space<vmem>>, vector<16x1xf32>
    %4 = vector.broadcast %3 : vector<16x1xf32> to vector<16x256xf32>
    %5 = arith.addf %2, %4 : vector<16x256xf32>
    %c0_5 = arith.constant 0 : index
    %c0_6 = arith.constant 0 : index
    %6 = vector.load %arg4[%c0_5, %c0_6] : memref<16x256xf32, #tpu.memory_space<vmem>>, vector<16x256xf32>
    tpu.vector_store %arg4[%c0_5, %c0_6], %5 {strides = array<i32>} : memref<16x256xf32, #tpu.memory_space<vmem>>, vector<16x256xf32>,
    return
  }
  func.func @transform_0(%arg0: i32) -> (i32, i32) {
    %c0_i32 = arith.constant 0 : i32
    %c0_i32_0 = arith.constant 0 : i32
    %c0_i32_1 = arith.constant 0 : i32
    return %c0_i32, %c0_i32_0 : i32, i32
  }
  func.func @transform_1(%arg0: i32) -> (i32, i32) {
    %c0_i32 = arith.constant 0 : i32
    %c0_i32_0 = arith.constant 0 : i32
    return %c0_i32, %arg0 : i32, i32
  }
  func.func @transform_2(%arg0: i32) -> (i32, i32) {
    %c0_i32 = arith.constant 0 : i32
    %c0_i32_0 = arith.constant 0 : i32
    %c0_i32_1 = arith.constant 0 : i32
    return %c0_i32, %c0_i32_0 : i32, i32
  }
  func.func @transform_3(%arg0: i32) -> (i32, i32) {
    %c0_i32 = arith.constant 0 : i32
    %c0_i32_0 = arith.constant 0 : i32
    return %c0_i32, %arg0 : i32, i32
  }
}

module attributes {stable_mosaic.version = 11 : i64} {
  func.func @_in_kernel(%arg0: i32, %arg1: memref<16x256xf32, #tpu.memory_space<vmem>>, %arg2: memref<16x256xf32, #tpu.memory_space<vmem>>) attributes {dimension_semantics = [#tpu.dimension_semantics<parallel>], iteration_bounds = array<i64: 1>, scalar_prefetch = 0 : i64, scratch_operands = 0 : i64, tpu.core_type = #tpu.core_type<tc>, window_params = [{transform_indices = @transform_0, window_bounds = array<i64: 16, 256>}, {transform_indices = @transform_1, window_bounds = array<i64: 16, 256>}]} {
    %c0 = arith.constant 0 : index
    %c0_0 = arith.constant 0 : index
    %0 = vector.load %arg1[%c0, %c0_0] : memref<16x256xf32, #tpu.memory_space<vmem>>, vector<16x256xf32>
    %cst = arith.constant dense<0.000000e+00> : vector<16xf32>
    %1 = vector.multi_reduction <add>, %0, %cst [1] : vector<16x256xf32> to vector<16xf32>
    %2 = vector.shape_cast %1 : vector<16xf32> to vector<16x1xf32>
    %cst_1 = arith.constant 3.906250e-03 : f32
    %3 = vector.broadcast %cst_1 : f32 to vector<16x1xf32>
    %4 = arith.mulf %2, %3 : vector<16x1xf32>
    %5 = vector.broadcast %4 : vector<16x1xf32> to vector<16x256xf32>
    %6 = arith.subf %0, %5 : vector<16x256xf32>
    %7 = arith.mulf %6, %6 : vector<16x256xf32>
    %cst_2 = arith.constant dense<0.000000e+00> : vector<16xf32>
    %8 = vector.multi_reduction <add>, %7, %cst_2 [1] : vector<16x256xf32> to vector<16xf32>
    %9 = vector.shape_cast %8 : vector<16xf32> to vector<16x1xf32>
    %cst_3 = arith.constant 3.906250e-03 : f32
    %10 = vector.broadcast %cst_3 : f32 to vector<16x1xf32>
    %11 = arith.mulf %9, %10 : vector<16x1xf32>
    %cst_4 = arith.constant 9.99999974E-6 : f32
    %12 = vector.broadcast %cst_4 : f32 to vector<16x1xf32>
    %13 = arith.addf %11, %12 : vector<16x1xf32>
    %14 = math.rsqrt %13 : vector<16x1xf32>
    %15 = vector.broadcast %14 : vector<16x1xf32> to vector<16x256xf32>
    %16 = arith.mulf %6, %15 : vector<16x256xf32>
    %cst_5 = arith.constant 0.000000e+00 : f32
    %17 = vector.broadcast %cst_5 : f32 to vector<16x256xf32>
    %18 = arith.maximumf %16, %17 : vector<16x256xf32>
    %c0_6 = arith.constant 0 : index
    %c0_7 = arith.constant 0 : index
    %19 = vector.load %arg2[%c0_6, %c0_7] : memref<16x256xf32, #tpu.memory_space<vmem>>, vector<16x256xf32>
    tpu.vector_store %arg2[%c0_6, %c0_7], %18 {strides = array<i32>} : memref<16x256xf32, #tpu.memory_space<vmem>>, vector<16x256xf32>,
    return
  }
  func.func @transform_0(%arg0: i32) -> (i32, i32) {
    %c0_i32 = arith.constant 0 : i32
    %c0_i32_0 = arith.constant 0 : i32
    return %arg0, %c0_i32 : i32, i32
  }
  func.func @transform_1(%arg0: i32) -> (i32, i32) {
    %c0_i32 = arith.constant 0 : i32
    %c0_i32_0 = arith.constant 0 : i32
    return %arg0, %c0_i32 : i32, i32
  }
}

module attributes {stable_mosaic.version = 11 : i64} {
  func.func @_gemm_bias_act_kernel(%arg0: i32, %arg1: memref<16x128xbf16, #tpu.memory_space<vmem>>, %arg2: memref<128x128xbf16, #tpu.memory_space<vmem>>, %arg3: memref<16x1xf32, #tpu.memory_space<vmem>>, %arg4: memref<16x128xf32, #tpu.memory_space<vmem>>) attributes {dimension_semantics = [#tpu.dimension_semantics<parallel>], iteration_bounds = array<i64: 1>, scalar_prefetch = 0 : i64, scratch_operands = 0 : i64, tpu.core_type = #tpu.core_type<tc>, window_params = [{pipeline_mode = #tpu.pipeline_mode<synchronous>, transform_indices = @transform_0, window_bounds = array<i64: 16, 128>}, {transform_indices = @transform_1, window_bounds = array<i64: 128, 128>}, {pipeline_mode = #tpu.pipeline_mode<synchronous>, transform_indices = @transform_2, window_bounds = array<i64: 16, 1>}, {transform_indices = @transform_3, window_bounds = array<i64: 16, 128>}]} {
    %c0 = arith.constant 0 : index
    %c0_0 = arith.constant 0 : index
    %0 = vector.load %arg1[%c0, %c0_0] : memref<16x128xbf16, #tpu.memory_space<vmem>>, vector<16x128xbf16>
    %c0_1 = arith.constant 0 : index
    %c0_2 = arith.constant 0 : index
    %1 = vector.load %arg2[%c0_1, %c0_2] : memref<128x128xbf16, #tpu.memory_space<vmem>>, vector<128x128xbf16>
    %cst = arith.constant dense<0.000000e+00> : vector<16x128xf32>
    %2 = tpu.matmul %0, %1, %cst {dimension_numbers = #tpu.dot_dimension_numbers<[1], [0], [0], [1], [0, 0, 1, 1], [], []>} : vector<16x128xbf16>, vector<128x128xbf16>, vector<16x128xf32> -> vector<16x128xf32>
    %c0_3 = arith.constant 0 : index
    %c0_4 = arith.constant 0 : index
    %3 = vector.load %arg3[%c0_3, %c0_4] : memref<16x1xf32, #tpu.memory_space<vmem>>, vector<16x1xf32>
    %4 = vector.broadcast %3 : vector<16x1xf32> to vector<16x128xf32>
    %5 = arith.addf %2, %4 : vector<16x128xf32>
    %c0_5 = arith.constant 0 : index
    %c0_6 = arith.constant 0 : index
    %6 = vector.load %arg4[%c0_5, %c0_6] : memref<16x128xf32, #tpu.memory_space<vmem>>, vector<16x128xf32>
    tpu.vector_store %arg4[%c0_5, %c0_6], %5 {strides = array<i32>} : memref<16x128xf32, #tpu.memory_space<vmem>>, vector<16x128xf32>,
    return
  }
  func.func @transform_0(%arg0: i32) -> (i32, i32) {
    %c0_i32 = arith.constant 0 : i32
    %c0_i32_0 = arith.constant 0 : i32
    %c0_i32_1 = arith.constant 0 : i32
    return %c0_i32, %c0_i32_0 : i32, i32
  }
  func.func @transform_1(%arg0: i32) -> (i32, i32) {
    %c0_i32 = arith.constant 0 : i32
    %c0_i32_0 = arith.constant 0 : i32
    return %c0_i32, %arg0 : i32, i32
  }
  func.func @transform_2(%arg0: i32) -> (i32, i32) {
    %c0_i32 = arith.constant 0 : i32
    %c0_i32_0 = arith.constant 0 : i32
    %c0_i32_1 = arith.constant 0 : i32
    return %c0_i32, %c0_i32_0 : i32, i32
  }
  func.func @transform_3(%arg0: i32) -> (i32, i32) {
    %c0_i32 = arith.constant 0 : i32
    %c0_i32_0 = arith.constant 0 : i32
    return %c0_i32, %arg0 : i32, i32
  }
}

module attributes {stable_mosaic.version = 11 : i64} {
  func.func @_in_kernel(%arg0: i32, %arg1: memref<32x64xf32, #tpu.memory_space<vmem>>, %arg2: memref<32x64xf32, #tpu.memory_space<vmem>>) attributes {dimension_semantics = [#tpu.dimension_semantics<parallel>], iteration_bounds = array<i64: 1>, scalar_prefetch = 0 : i64, scratch_operands = 0 : i64, tpu.core_type = #tpu.core_type<tc>, window_params = [{transform_indices = @transform_0, window_bounds = array<i64: 32, 64>}, {transform_indices = @transform_1, window_bounds = array<i64: 32, 64>}]} {
    %c0 = arith.constant 0 : index
    %c0_0 = arith.constant 0 : index
    %0 = vector.load %arg1[%c0, %c0_0] : memref<32x64xf32, #tpu.memory_space<vmem>>, vector<32x64xf32>
    %cst = arith.constant dense<0.000000e+00> : vector<32xf32>
    %1 = vector.multi_reduction <add>, %0, %cst [1] : vector<32x64xf32> to vector<32xf32>
    %2 = vector.shape_cast %1 : vector<32xf32> to vector<32x1xf32>
    %cst_1 = arith.constant 1.562500e-02 : f32
    %3 = vector.broadcast %cst_1 : f32 to vector<32x1xf32>
    %4 = arith.mulf %2, %3 : vector<32x1xf32>
    %5 = vector.broadcast %4 : vector<32x1xf32> to vector<32x64xf32>
    %6 = arith.subf %0, %5 : vector<32x64xf32>
    %7 = arith.mulf %6, %6 : vector<32x64xf32>
    %cst_2 = arith.constant dense<0.000000e+00> : vector<32xf32>
    %8 = vector.multi_reduction <add>, %7, %cst_2 [1] : vector<32x64xf32> to vector<32xf32>
    %9 = vector.shape_cast %8 : vector<32xf32> to vector<32x1xf32>
    %cst_3 = arith.constant 1.562500e-02 : f32
    %10 = vector.broadcast %cst_3 : f32 to vector<32x1xf32>
    %11 = arith.mulf %9, %10 : vector<32x1xf32>
    %cst_4 = arith.constant 9.99999974E-6 : f32
    %12 = vector.broadcast %cst_4 : f32 to vector<32x1xf32>
    %13 = arith.addf %11, %12 : vector<32x1xf32>
    %14 = math.rsqrt %13 : vector<32x1xf32>
    %15 = vector.broadcast %14 : vector<32x1xf32> to vector<32x64xf32>
    %16 = arith.mulf %6, %15 : vector<32x64xf32>
    %cst_5 = arith.constant 0.000000e+00 : f32
    %17 = vector.broadcast %cst_5 : f32 to vector<32x64xf32>
    %18 = arith.maximumf %16, %17 : vector<32x64xf32>
    %c0_6 = arith.constant 0 : index
    %c0_7 = arith.constant 0 : index
    %19 = vector.load %arg2[%c0_6, %c0_7] : memref<32x64xf32, #tpu.memory_space<vmem>>, vector<32x64xf32>
    tpu.vector_store %arg2[%c0_6, %c0_7], %18 {strides = array<i32>} : memref<32x64xf32, #tpu.memory_space<vmem>>, vector<32x64xf32>,
    return
  }
  func.func @transform_0(%arg0: i32) -> (i32, i32) {
    %c0_i32 = arith.constant 0 : i32
    %c0_i32_0 = arith.constant 0 : i32
    return %arg0, %c0_i32 : i32, i32
  }
  func.func @transform_1(%arg0: i32) -> (i32, i32) {
    %c0_i32 = arith.constant 0 : i32
    %c0_i32_0 = arith.constant 0 : i32
    return %arg0, %c0_i32 : i32, i32
  }
}

module attributes {stable_mosaic.version = 11 : i64} {
  func.func @_gemm_bias_act_kernel(%arg0: i32, %arg1: memref<32x256xbf16, #tpu.memory_space<vmem>>, %arg2: memref<256x128xbf16, #tpu.memory_space<vmem>>, %arg3: memref<32x1xf32, #tpu.memory_space<vmem>>, %arg4: memref<32x128xf32, #tpu.memory_space<vmem>>) attributes {dimension_semantics = [#tpu.dimension_semantics<parallel>], iteration_bounds = array<i64: 1>, scalar_prefetch = 0 : i64, scratch_operands = 0 : i64, tpu.core_type = #tpu.core_type<tc>, window_params = [{pipeline_mode = #tpu.pipeline_mode<synchronous>, transform_indices = @transform_0, window_bounds = array<i64: 32, 256>}, {transform_indices = @transform_1, window_bounds = array<i64: 256, 128>}, {pipeline_mode = #tpu.pipeline_mode<synchronous>, transform_indices = @transform_2, window_bounds = array<i64: 32, 1>}, {transform_indices = @transform_3, window_bounds = array<i64: 32, 128>}]} {
    %c0 = arith.constant 0 : index
    %c0_0 = arith.constant 0 : index
    %0 = vector.load %arg1[%c0, %c0_0] : memref<32x256xbf16, #tpu.memory_space<vmem>>, vector<32x256xbf16>
    %c0_1 = arith.constant 0 : index
    %c0_2 = arith.constant 0 : index
    %1 = vector.load %arg2[%c0_1, %c0_2] : memref<256x128xbf16, #tpu.memory_space<vmem>>, vector<256x128xbf16>
    %cst = arith.constant dense<0.000000e+00> : vector<32x128xf32>
    %2 = tpu.matmul %0, %1, %cst {dimension_numbers = #tpu.dot_dimension_numbers<[1], [0], [0], [1], [0, 0, 1, 1], [], []>} : vector<32x256xbf16>, vector<256x128xbf16>, vector<32x128xf32> -> vector<32x128xf32>
    %c0_3 = arith.constant 0 : index
    %c0_4 = arith.constant 0 : index
    %3 = vector.load %arg3[%c0_3, %c0_4] : memref<32x1xf32, #tpu.memory_space<vmem>>, vector<32x1xf32>
    %4 = vector.broadcast %3 : vector<32x1xf32> to vector<32x128xf32>
    %5 = arith.addf %2, %4 : vector<32x128xf32>
    %c0_5 = arith.constant 0 : index
    %c0_6 = arith.constant 0 : index
    %6 = vector.load %arg4[%c0_5, %c0_6] : memref<32x128xf32, #tpu.memory_space<vmem>>, vector<32x128xf32>
    tpu.vector_store %arg4[%c0_5, %c0_6], %5 {strides = array<i32>} : memref<32x128xf32, #tpu.memory_space<vmem>>, vector<32x128xf32>,
    return
  }
  func.func @transform_0(%arg0: i32) -> (i32, i32) {
    %c0_i32 = arith.constant 0 : i32
    %c0_i32_0 = arith.constant 0 : i32
    %c0_i32_1 = arith.constant 0 : i32
    return %c0_i32, %c0_i32_0 : i32, i32
  }
  func.func @transform_1(%arg0: i32) -> (i32, i32) {
    %c0_i32 = arith.constant 0 : i32
    %c0_i32_0 = arith.constant 0 : i32
    return %c0_i32, %arg0 : i32, i32
  }
  func.func @transform_2(%arg0: i32) -> (i32, i32) {
    %c0_i32 = arith.constant 0 : i32
    %c0_i32_0 = arith.constant 0 : i32
    %c0_i32_1 = arith.constant 0 : i32
    return %c0_i32, %c0_i32_0 : i32, i32
  }
  func.func @transform_3(%arg0: i32) -> (i32, i32) {
    %c0_i32 = arith.constant 0 : i32
    %c0_i32_0 = arith.constant 0 : i32
    return %c0_i32, %arg0 : i32, i32
  }
}

module attributes {stable_mosaic.version = 11 : i64} {
  func.func @_in_kernel(%arg0: i32, %arg1: memref<64x16xf32, #tpu.memory_space<vmem>>, %arg2: memref<64x16xf32, #tpu.memory_space<vmem>>) attributes {dimension_semantics = [#tpu.dimension_semantics<parallel>], iteration_bounds = array<i64: 1>, scalar_prefetch = 0 : i64, scratch_operands = 0 : i64, tpu.core_type = #tpu.core_type<tc>, window_params = [{transform_indices = @transform_0, window_bounds = array<i64: 64, 16>}, {transform_indices = @transform_1, window_bounds = array<i64: 64, 16>}]} {
    %c0 = arith.constant 0 : index
    %c0_0 = arith.constant 0 : index
    %0 = vector.load %arg1[%c0, %c0_0] : memref<64x16xf32, #tpu.memory_space<vmem>>, vector<64x16xf32>
    %cst = arith.constant dense<0.000000e+00> : vector<64xf32>
    %1 = vector.multi_reduction <add>, %0, %cst [1] : vector<64x16xf32> to vector<64xf32>
    %2 = vector.shape_cast %1 : vector<64xf32> to vector<64x1xf32>
    %cst_1 = arith.constant 6.250000e-02 : f32
    %3 = vector.broadcast %cst_1 : f32 to vector<64x1xf32>
    %4 = arith.mulf %2, %3 : vector<64x1xf32>
    %5 = vector.broadcast %4 : vector<64x1xf32> to vector<64x16xf32>
    %6 = arith.subf %0, %5 : vector<64x16xf32>
    %7 = arith.mulf %6, %6 : vector<64x16xf32>
    %cst_2 = arith.constant dense<0.000000e+00> : vector<64xf32>
    %8 = vector.multi_reduction <add>, %7, %cst_2 [1] : vector<64x16xf32> to vector<64xf32>
    %9 = vector.shape_cast %8 : vector<64xf32> to vector<64x1xf32>
    %cst_3 = arith.constant 6.250000e-02 : f32
    %10 = vector.broadcast %cst_3 : f32 to vector<64x1xf32>
    %11 = arith.mulf %9, %10 : vector<64x1xf32>
    %cst_4 = arith.constant 9.99999974E-6 : f32
    %12 = vector.broadcast %cst_4 : f32 to vector<64x1xf32>
    %13 = arith.addf %11, %12 : vector<64x1xf32>
    %14 = math.rsqrt %13 : vector<64x1xf32>
    %15 = vector.broadcast %14 : vector<64x1xf32> to vector<64x16xf32>
    %16 = arith.mulf %6, %15 : vector<64x16xf32>
    %cst_5 = arith.constant 0.000000e+00 : f32
    %17 = vector.broadcast %cst_5 : f32 to vector<64x16xf32>
    %18 = arith.maximumf %16, %17 : vector<64x16xf32>
    %c0_6 = arith.constant 0 : index
    %c0_7 = arith.constant 0 : index
    %19 = vector.load %arg2[%c0_6, %c0_7] : memref<64x16xf32, #tpu.memory_space<vmem>>, vector<64x16xf32>
    tpu.vector_store %arg2[%c0_6, %c0_7], %18 {strides = array<i32>} : memref<64x16xf32, #tpu.memory_space<vmem>>, vector<64x16xf32>,
    return
  }
  func.func @transform_0(%arg0: i32) -> (i32, i32) {
    %c0_i32 = arith.constant 0 : i32
    %c0_i32_0 = arith.constant 0 : i32
    return %arg0, %c0_i32 : i32, i32
  }
  func.func @transform_1(%arg0: i32) -> (i32, i32) {
    %c0_i32 = arith.constant 0 : i32
    %c0_i32_0 = arith.constant 0 : i32
    return %arg0, %c0_i32 : i32, i32
  }
}

module attributes {stable_mosaic.version = 11 : i64} {
  func.func @_gemm_bias_act_kernel(%arg0: i32, %arg1: memref<32x384xbf16, #tpu.memory_space<vmem>>, %arg2: memref<384x128xbf16, #tpu.memory_space<vmem>>, %arg3: memref<32x1xf32, #tpu.memory_space<vmem>>, %arg4: memref<32x128xf32, #tpu.memory_space<vmem>>) attributes {dimension_semantics = [#tpu.dimension_semantics<parallel>], iteration_bounds = array<i64: 1>, scalar_prefetch = 0 : i64, scratch_operands = 0 : i64, tpu.core_type = #tpu.core_type<tc>, window_params = [{pipeline_mode = #tpu.pipeline_mode<synchronous>, transform_indices = @transform_0, window_bounds = array<i64: 32, 384>}, {transform_indices = @transform_1, window_bounds = array<i64: 384, 128>}, {pipeline_mode = #tpu.pipeline_mode<synchronous>, transform_indices = @transform_2, window_bounds = array<i64: 32, 1>}, {transform_indices = @transform_3, window_bounds = array<i64: 32, 128>}]} {
    %c0 = arith.constant 0 : index
    %c0_0 = arith.constant 0 : index
    %0 = vector.load %arg1[%c0, %c0_0] : memref<32x384xbf16, #tpu.memory_space<vmem>>, vector<32x384xbf16>
    %c0_1 = arith.constant 0 : index
    %c0_2 = arith.constant 0 : index
    %1 = vector.load %arg2[%c0_1, %c0_2] : memref<384x128xbf16, #tpu.memory_space<vmem>>, vector<384x128xbf16>
    %cst = arith.constant dense<0.000000e+00> : vector<32x128xf32>
    %2 = tpu.matmul %0, %1, %cst {dimension_numbers = #tpu.dot_dimension_numbers<[1], [0], [0], [1], [0, 0, 1, 1], [], []>} : vector<32x384xbf16>, vector<384x128xbf16>, vector<32x128xf32> -> vector<32x128xf32>
    %c0_3 = arith.constant 0 : index
    %c0_4 = arith.constant 0 : index
    %3 = vector.load %arg3[%c0_3, %c0_4] : memref<32x1xf32, #tpu.memory_space<vmem>>, vector<32x1xf32>
    %4 = vector.broadcast %3 : vector<32x1xf32> to vector<32x128xf32>
    %5 = arith.addf %2, %4 : vector<32x128xf32>
    %c0_5 = arith.constant 0 : index
    %c0_6 = arith.constant 0 : index
    %6 = vector.load %arg4[%c0_5, %c0_6] : memref<32x128xf32, #tpu.memory_space<vmem>>, vector<32x128xf32>
    tpu.vector_store %arg4[%c0_5, %c0_6], %5 {strides = array<i32>} : memref<32x128xf32, #tpu.memory_space<vmem>>, vector<32x128xf32>,
    return
  }
  func.func @transform_0(%arg0: i32) -> (i32, i32) {
    %c0_i32 = arith.constant 0 : i32
    %c0_i32_0 = arith.constant 0 : i32
    %c0_i32_1 = arith.constant 0 : i32
    return %c0_i32, %c0_i32_0 : i32, i32
  }
  func.func @transform_1(%arg0: i32) -> (i32, i32) {
    %c0_i32 = arith.constant 0 : i32
    %c0_i32_0 = arith.constant 0 : i32
    return %c0_i32, %arg0 : i32, i32
  }
  func.func @transform_2(%arg0: i32) -> (i32, i32) {
    %c0_i32 = arith.constant 0 : i32
    %c0_i32_0 = arith.constant 0 : i32
    %c0_i32_1 = arith.constant 0 : i32
    return %c0_i32, %c0_i32_0 : i32, i32
  }
  func.func @transform_3(%arg0: i32) -> (i32, i32) {
    %c0_i32 = arith.constant 0 : i32
    %c0_i32_0 = arith.constant 0 : i32
    return %c0_i32, %arg0 : i32, i32
  }
}

module attributes {stable_mosaic.version = 11 : i64} {
  func.func @_in_res_kernel(%arg0: i32, %arg1: memref<64x16xf32, #tpu.memory_space<vmem>>, %arg2: memref<64x16xf32, #tpu.memory_space<vmem>>, %arg3: memref<64x16xf32, #tpu.memory_space<vmem>>) attributes {dimension_semantics = [#tpu.dimension_semantics<parallel>], iteration_bounds = array<i64: 1>, scalar_prefetch = 0 : i64, scratch_operands = 0 : i64, tpu.core_type = #tpu.core_type<tc>, window_params = [{transform_indices = @transform_0, window_bounds = array<i64: 64, 16>}, {transform_indices = @transform_1, window_bounds = array<i64: 64, 16>}, {transform_indices = @transform_2, window_bounds = array<i64: 64, 16>}]} {
    %c0 = arith.constant 0 : index
    %c0_0 = arith.constant 0 : index
    %0 = vector.load %arg1[%c0, %c0_0] : memref<64x16xf32, #tpu.memory_space<vmem>>, vector<64x16xf32>
    %cst = arith.constant dense<0.000000e+00> : vector<64xf32>
    %1 = vector.multi_reduction <add>, %0, %cst [1] : vector<64x16xf32> to vector<64xf32>
    %2 = vector.shape_cast %1 : vector<64xf32> to vector<64x1xf32>
    %cst_1 = arith.constant 6.250000e-02 : f32
    %3 = vector.broadcast %cst_1 : f32 to vector<64x1xf32>
    %4 = arith.mulf %2, %3 : vector<64x1xf32>
    %5 = vector.broadcast %4 : vector<64x1xf32> to vector<64x16xf32>
    %6 = arith.subf %0, %5 : vector<64x16xf32>
    %7 = arith.mulf %6, %6 : vector<64x16xf32>
    %cst_2 = arith.constant dense<0.000000e+00> : vector<64xf32>
    %8 = vector.multi_reduction <add>, %7, %cst_2 [1] : vector<64x16xf32> to vector<64xf32>
    %9 = vector.shape_cast %8 : vector<64xf32> to vector<64x1xf32>
    %cst_3 = arith.constant 6.250000e-02 : f32
    %10 = vector.broadcast %cst_3 : f32 to vector<64x1xf32>
    %11 = arith.mulf %9, %10 : vector<64x1xf32>
    %cst_4 = arith.constant 9.99999974E-6 : f32
    %12 = vector.broadcast %cst_4 : f32 to vector<64x1xf32>
    %13 = arith.addf %11, %12 : vector<64x1xf32>
    %14 = math.rsqrt %13 : vector<64x1xf32>
    %15 = vector.broadcast %14 : vector<64x1xf32> to vector<64x16xf32>
    %16 = arith.mulf %6, %15 : vector<64x16xf32>
    %c0_5 = arith.constant 0 : index
    %c0_6 = arith.constant 0 : index
    %17 = vector.load %arg2[%c0_5, %c0_6] : memref<64x16xf32, #tpu.memory_space<vmem>>, vector<64x16xf32>
    %18 = arith.addf %16, %17 : vector<64x16xf32>
    %c0_7 = arith.constant 0 : index
    %c0_8 = arith.constant 0 : index
    %19 = vector.load %arg3[%c0_7, %c0_8] : memref<64x16xf32, #tpu.memory_space<vmem>>, vector<64x16xf32>
    tpu.vector_store %arg3[%c0_7, %c0_8], %18 {strides = array<i32>} : memref<64x16xf32, #tpu.memory_space<vmem>>, vector<64x16xf32>,
    return
  }
  func.func @transform_0(%arg0: i32) -> (i32, i32) {
    %c0_i32 = arith.constant 0 : i32
    %c0_i32_0 = arith.constant 0 : i32
    return %arg0, %c0_i32 : i32, i32
  }
  func.func @transform_1(%arg0: i32) -> (i32, i32) {
    %c0_i32 = arith.constant 0 : i32
    %c0_i32_0 = arith.constant 0 : i32
    return %arg0, %c0_i32 : i32, i32
  }
  func.func @transform_2(%arg0: i32) -> (i32, i32) {
    %c0_i32 = arith.constant 0 : i32
    %c0_i32_0 = arith.constant 0 : i32
    return %arg0, %c0_i32 : i32, i32
  }
}

module attributes {stable_mosaic.version = 11 : i64} {
  func.func @_gemm_bias_act_kernel(%arg0: i32, %arg1: memref<64x128xbf16, #tpu.memory_space<vmem>>, %arg2: memref<128x128xbf16, #tpu.memory_space<vmem>>, %arg3: memref<64x1xf32, #tpu.memory_space<vmem>>, %arg4: memref<64x128xf32, #tpu.memory_space<vmem>>) attributes {dimension_semantics = [#tpu.dimension_semantics<parallel>], iteration_bounds = array<i64: 1>, scalar_prefetch = 0 : i64, scratch_operands = 0 : i64, tpu.core_type = #tpu.core_type<tc>, window_params = [{pipeline_mode = #tpu.pipeline_mode<synchronous>, transform_indices = @transform_0, window_bounds = array<i64: 64, 128>}, {transform_indices = @transform_1, window_bounds = array<i64: 128, 128>}, {pipeline_mode = #tpu.pipeline_mode<synchronous>, transform_indices = @transform_2, window_bounds = array<i64: 64, 1>}, {transform_indices = @transform_3, window_bounds = array<i64: 64, 128>}]} {
    %c0 = arith.constant 0 : index
    %c0_0 = arith.constant 0 : index
    %0 = vector.load %arg1[%c0, %c0_0] : memref<64x128xbf16, #tpu.memory_space<vmem>>, vector<64x128xbf16>
    %c0_1 = arith.constant 0 : index
    %c0_2 = arith.constant 0 : index
    %1 = vector.load %arg2[%c0_1, %c0_2] : memref<128x128xbf16, #tpu.memory_space<vmem>>, vector<128x128xbf16>
    %cst = arith.constant dense<0.000000e+00> : vector<64x128xf32>
    %2 = tpu.matmul %0, %1, %cst {dimension_numbers = #tpu.dot_dimension_numbers<[1], [0], [0], [1], [0, 0, 1, 1], [], []>} : vector<64x128xbf16>, vector<128x128xbf16>, vector<64x128xf32> -> vector<64x128xf32>
    %c0_3 = arith.constant 0 : index
    %c0_4 = arith.constant 0 : index
    %3 = vector.load %arg3[%c0_3, %c0_4] : memref<64x1xf32, #tpu.memory_space<vmem>>, vector<64x1xf32>
    %4 = vector.broadcast %3 : vector<64x1xf32> to vector<64x128xf32>
    %5 = arith.addf %2, %4 : vector<64x128xf32>
    %c0_5 = arith.constant 0 : index
    %c0_6 = arith.constant 0 : index
    %6 = vector.load %arg4[%c0_5, %c0_6] : memref<64x128xf32, #tpu.memory_space<vmem>>, vector<64x128xf32>
    tpu.vector_store %arg4[%c0_5, %c0_6], %5 {strides = array<i32>} : memref<64x128xf32, #tpu.memory_space<vmem>>, vector<64x128xf32>,
    return
  }
  func.func @transform_0(%arg0: i32) -> (i32, i32) {
    %c0_i32 = arith.constant 0 : i32
    %c0_i32_0 = arith.constant 0 : i32
    %c0_i32_1 = arith.constant 0 : i32
    return %c0_i32, %c0_i32_0 : i32, i32
  }
  func.func @transform_1(%arg0: i32) -> (i32, i32) {
    %c0_i32 = arith.constant 0 : i32
    %c0_i32_0 = arith.constant 0 : i32
    return %c0_i32, %arg0 : i32, i32
  }
  func.func @transform_2(%arg0: i32) -> (i32, i32) {
    %c0_i32 = arith.constant 0 : i32
    %c0_i32_0 = arith.constant 0 : i32
    %c0_i32_1 = arith.constant 0 : i32
    return %c0_i32, %c0_i32_0 : i32, i32
  }
  func.func @transform_3(%arg0: i32) -> (i32, i32) {
    %c0_i32 = arith.constant 0 : i32
    %c0_i32_0 = arith.constant 0 : i32
    return %c0_i32, %arg0 : i32, i32
  }
}

module attributes {stable_mosaic.version = 11 : i64} {
  func.func @_gemm_bias_act_kernel(%arg0: i32, %arg1: memref<32x128xbf16, #tpu.memory_space<vmem>>, %arg2: memref<128x128xbf16, #tpu.memory_space<vmem>>, %arg3: memref<32x1xf32, #tpu.memory_space<vmem>>, %arg4: memref<32x128xf32, #tpu.memory_space<vmem>>) attributes {dimension_semantics = [#tpu.dimension_semantics<parallel>], iteration_bounds = array<i64: 1>, scalar_prefetch = 0 : i64, scratch_operands = 0 : i64, tpu.core_type = #tpu.core_type<tc>, window_params = [{pipeline_mode = #tpu.pipeline_mode<synchronous>, transform_indices = @transform_0, window_bounds = array<i64: 32, 128>}, {transform_indices = @transform_1, window_bounds = array<i64: 128, 128>}, {pipeline_mode = #tpu.pipeline_mode<synchronous>, transform_indices = @transform_2, window_bounds = array<i64: 32, 1>}, {transform_indices = @transform_3, window_bounds = array<i64: 32, 128>}]} {
    %c0 = arith.constant 0 : index
    %c0_0 = arith.constant 0 : index
    %0 = vector.load %arg1[%c0, %c0_0] : memref<32x128xbf16, #tpu.memory_space<vmem>>, vector<32x128xbf16>
    %c0_1 = arith.constant 0 : index
    %c0_2 = arith.constant 0 : index
    %1 = vector.load %arg2[%c0_1, %c0_2] : memref<128x128xbf16, #tpu.memory_space<vmem>>, vector<128x128xbf16>
    %cst = arith.constant dense<0.000000e+00> : vector<32x128xf32>
    %2 = tpu.matmul %0, %1, %cst {dimension_numbers = #tpu.dot_dimension_numbers<[1], [0], [0], [1], [0, 0, 1, 1], [], []>} : vector<32x128xbf16>, vector<128x128xbf16>, vector<32x128xf32> -> vector<32x128xf32>
    %c0_3 = arith.constant 0 : index
    %c0_4 = arith.constant 0 : index
    %3 = vector.load %arg3[%c0_3, %c0_4] : memref<32x1xf32, #tpu.memory_space<vmem>>, vector<32x1xf32>
    %4 = vector.broadcast %3 : vector<32x1xf32> to vector<32x128xf32>
    %5 = arith.addf %2, %4 : vector<32x128xf32>
    %c0_5 = arith.constant 0 : index
    %c0_6 = arith.constant 0 : index
    %6 = vector.load %arg4[%c0_5, %c0_6] : memref<32x128xf32, #tpu.memory_space<vmem>>, vector<32x128xf32>
    tpu.vector_store %arg4[%c0_5, %c0_6], %5 {strides = array<i32>} : memref<32x128xf32, #tpu.memory_space<vmem>>, vector<32x128xf32>,
    return
  }
  func.func @transform_0(%arg0: i32) -> (i32, i32) {
    %c0_i32 = arith.constant 0 : i32
    %c0_i32_0 = arith.constant 0 : i32
    %c0_i32_1 = arith.constant 0 : i32
    return %c0_i32, %c0_i32_0 : i32, i32
  }
  func.func @transform_1(%arg0: i32) -> (i32, i32) {
    %c0_i32 = arith.constant 0 : i32
    %c0_i32_0 = arith.constant 0 : i32
    return %c0_i32, %arg0 : i32, i32
  }
  func.func @transform_2(%arg0: i32) -> (i32, i32) {
    %c0_i32 = arith.constant 0 : i32
    %c0_i32_0 = arith.constant 0 : i32
    %c0_i32_1 = arith.constant 0 : i32
    return %c0_i32, %c0_i32_0 : i32, i32
  }
  func.func @transform_3(%arg0: i32) -> (i32, i32) {
    %c0_i32 = arith.constant 0 : i32
    %c0_i32_0 = arith.constant 0 : i32
    return %c0_i32, %arg0 : i32, i32
  }
}

module attributes {stable_mosaic.version = 11 : i64} {
  func.func @_gemm_bias_act_kernel(%arg0: i32, %arg1: memref<16x512xbf16, #tpu.memory_space<vmem>>, %arg2: memref<512x256xbf16, #tpu.memory_space<vmem>>, %arg3: memref<16x1xf32, #tpu.memory_space<vmem>>, %arg4: memref<16x256xf32, #tpu.memory_space<vmem>>) attributes {dimension_semantics = [#tpu.dimension_semantics<parallel>], iteration_bounds = array<i64: 2>, scalar_prefetch = 0 : i64, scratch_operands = 0 : i64, tpu.core_type = #tpu.core_type<tc>, window_params = [{pipeline_mode = #tpu.pipeline_mode<synchronous>, transform_indices = @transform_0, window_bounds = array<i64: 16, 512>}, {transform_indices = @transform_1, window_bounds = array<i64: 512, 256>}, {pipeline_mode = #tpu.pipeline_mode<synchronous>, transform_indices = @transform_2, window_bounds = array<i64: 16, 1>}, {transform_indices = @transform_3, window_bounds = array<i64: 16, 256>}]} {
    %c0 = arith.constant 0 : index
    %c0_0 = arith.constant 0 : index
    %0 = vector.load %arg1[%c0, %c0_0] : memref<16x512xbf16, #tpu.memory_space<vmem>>, vector<16x512xbf16>
    %c0_1 = arith.constant 0 : index
    %c0_2 = arith.constant 0 : index
    %1 = vector.load %arg2[%c0_1, %c0_2] : memref<512x256xbf16, #tpu.memory_space<vmem>>, vector<512x256xbf16>
    %cst = arith.constant dense<0.000000e+00> : vector<16x256xf32>
    %2 = tpu.matmul %0, %1, %cst {dimension_numbers = #tpu.dot_dimension_numbers<[1], [0], [0], [1], [0, 0, 1, 1], [], []>} : vector<16x512xbf16>, vector<512x256xbf16>, vector<16x256xf32> -> vector<16x256xf32>
    %c0_3 = arith.constant 0 : index
    %c0_4 = arith.constant 0 : index
    %3 = vector.load %arg3[%c0_3, %c0_4] : memref<16x1xf32, #tpu.memory_space<vmem>>, vector<16x1xf32>
    %4 = vector.broadcast %3 : vector<16x1xf32> to vector<16x256xf32>
    %5 = arith.addf %2, %4 : vector<16x256xf32>
    %6 = math.tanh %5 : vector<16x256xf32>
    %c0_5 = arith.constant 0 : index
    %c0_6 = arith.constant 0 : index
    %7 = vector.load %arg4[%c0_5, %c0_6] : memref<16x256xf32, #tpu.memory_space<vmem>>, vector<16x256xf32>
    tpu.vector_store %arg4[%c0_5, %c0_6], %6 {strides = array<i32>} : memref<16x256xf32, #tpu.memory_space<vmem>>, vector<16x256xf32>,
    return
  }
  func.func @transform_0(%arg0: i32) -> (i32, i32) {
    %c0_i32 = arith.constant 0 : i32
    %c0_i32_0 = arith.constant 0 : i32
    %c0_i32_1 = arith.constant 0 : i32
    return %c0_i32, %c0_i32_0 : i32, i32
  }
  func.func @transform_1(%arg0: i32) -> (i32, i32) {
    %c0_i32 = arith.constant 0 : i32
    %c0_i32_0 = arith.constant 0 : i32
    return %c0_i32, %arg0 : i32, i32
  }
  func.func @transform_2(%arg0: i32) -> (i32, i32) {
    %c0_i32 = arith.constant 0 : i32
    %c0_i32_0 = arith.constant 0 : i32
    %c0_i32_1 = arith.constant 0 : i32
    return %c0_i32, %c0_i32_0 : i32, i32
  }
  func.func @transform_3(%arg0: i32) -> (i32, i32) {
    %c0_i32 = arith.constant 0 : i32
    %c0_i32_0 = arith.constant 0 : i32
    return %c0_i32, %arg0 : i32, i32
  }
}

</mosaic_0001>

<bundles_post_ra>
// kernel: _forward_impl.20
= control target key start
LH: loop header
LB: loop body
LE: loop exit
PB: predicated region body
PF: predicated region fallthrough
CT: control target
= control target key end

     0   :  { %s94_s0 = inlined_call_operand.vmem [shape: f32[16,256], index: 0, kind: input, shape index: {}]   ;;  %s95_s1 = inlined_call_operand.vmem [shape: f32[16,256], index: 1, kind: output, shape index: {}]  }
   0x1   :  { %v8_v0 = vld [vmem:[%s94_s0] sm:$0xff]  ;;  %v9_v1 = vld [vmem:[%s94_s0 + $0x8] sm:$0xff]  ;;  %v10_v2 = vld [vmem:[%s94_s0 + $0x10] sm:$0xff] }
   0x2   :  { %v12_v3 = vadd.f32 %v9_v1, %v8_v0  ;;  %v11_v4 = vld [vmem:[%s94_s0 + $0x18] sm:$0xff] }
   0x3   :  { %v15_v5 = vadd.f32 %v11_v4, %v10_v2 }
   0x4   :  { %13 = vadd.xlane.f32.xlu0 %v12_v3 }
   0x8   :  { %16 = vadd.xlane.f32.xlu0 %v15_v5 }
  0x91   :  { %v14_v6 = vpop.xlane.xlu0 %13 }
  0x92   :  { %v18_v7 = vmul.f32 0.00390625, %v14_v6 }
  0x94   :  { %v20_v8 = vsub.f32 %v8_v0, %v18_v7  ;;  %v21_v9 = vsub.f32 %v9_v1, %v18_v7 }
  0x95   :  { %v17_v10 = vpop.xlane.xlu0 %16 }
  0x96   :  { %v19_v11 = vmul.f32 0.00390625, %v17_v10  ;;  %v24_v12 = vmul.f32 %v20_v8, %v20_v8  ;;  %v25_v13 = vmul.f32 %v21_v9, %v21_v9 }
  0x98   :  { %v22_v14 = vsub.f32 %v10_v2, %v19_v11  ;;  %v23_v15 = vsub.f32 %v11_v4, %v19_v11  ;;  %v28_v16 = vadd.f32 %v25_v13, %v24_v12 }
  0x9a   :  { %29 = vadd.xlane.f32.xlu1 %v28_v16  ;;  %v26_v17 = vmul.f32 %v22_v14, %v22_v14  ;;  %v27_v18 = vmul.f32 %v23_v15, %v23_v15 }
  0x9c   :  { %v31_v19 = vadd.f32 %v27_v18, %v26_v17 }
  0x9e   :  { %32 = vadd.xlane.f32.xlu1 %v31_v19 }
 0x127   :  { %v30_v20 = vpop.xlane.xlu1 %29 }
 0x128   :  { %v34_v21 = vmul.f32 0.00390625, %v30_v20 }
 0x12a   :  { %v36_v22 = vadd.f32 1e-05, %v34_v21 }
 0x12b   :  { %v33_v23 = vpop.xlane.xlu1 %32 }
 0x12c   :  { %56 = vrsqrt.f32 %v36_v22  ;;  %v35_v24 = vmul.f32 0.00390625, %v33_v23 }
 0x12e   :  { %v37_v25 = vadd.f32 1e-05, %v35_v24 }
 0x130   :  { %58 = vrsqrt.f32 %v37_v25 }
 0x136   :  { %v57_v26 = vpop.eup %56 }
 0x137   :  { %v40_v27 = vmul.f32 %v57_v26, %v20_v8  ;;  %v41_v28 = vmul.f32 %v57_v26, %v21_v9 }
 0x139   :  { %v44_v29 = vmax.f32 %v40_v27, 0.0  ;;  %v45_v30 = vmax.f32 %v41_v28, 0.0 }
 0x13a   :  { %v59_v31 = vpop.eup %58 }
 0x13b   :  { %48 = vst [vmem:[%s95_s1] sm:$0xff] %v44_v29  ;;  %49 = vst [vmem:[%s95_s1 + $0x8] sm:$0xff] %v45_v30  ;;  %v42_v32 = vmul.f32 %v59_v31, %v22_v14  ;;  %v43_v33 = vmul.f32 %v59_v31, %v23_v15 }
 0x13d   :  { %v46_v34 = vmax.f32 %v42_v32, 0.0  ;;  %v47_v35 = vmax.f32 %v43_v33, 0.0 }
 0x13f   :  { %50 = vst [vmem:[%s95_s1 + $0x10] sm:$0xff] %v46_v34  ;;  %51 = vst [vmem:[%s95_s1 + $0x18] sm:$0xff] %v47_v35 }

// kernel: _forward_impl.19
= control target key start
LH: loop header
LB: loop body
LE: loop exit
PB: predicated region body
PF: predicated region fallthrough
CT: control target
= control target key end

     0   :  { %s851_s12 = smov 0   ;;  %s853_s13 = smov 0   ;;  %s1029_s0 = inlined_call_operand.vmem [shape: bf16[16,256], index: 0, kind: input, shape index: {}]   ;;  %s1030_s1 = inlined_call_operand.vmem [shape: bf16[256,512], index: 1, kind: input, shape index: {}]   ;;  %s1031_s2 = inlined_call_operand.vmem [shape: f32[16,1], index: 2, kind: input, shape index: {}]   ;;  %s1032_s3 = inlined_call_operand.vmem [shape: f32[16,512], index: 3, kind: output, shape index: {}]  }
   0x1   :  { %s855_s14 = smov 0  }
   0x2 LB: > { %s678_s15 = sadd.s32 4294967295, %s828_s14   ;;  %s868_s16 = sadd.s32 1, %s828_s14   ;;  %s828_s14 = sphi %s855_s14, %s1036_s14   ;;  %s824_s13 = sphi %s853_s13, %s1035_s13   ;;  %s820_s12 = sphi %s851_s12, %s1034_s12  }
   0x3   : > { %s38_s17 = ssub.s32 %s828_s14, %s868_s16  ;;  %s41_s18 = sadd.s32 1, %s824_s13 }
   0x4   : > { %p39_p0 = scmp.eq.s32.totalorder %s38_s17, 0  ;;  %p48_p1 = scmp.ne.s32.totalorder %s824_s13, %s820_s12 }
   0x5   : > { %p49_p2 = scmp.eq.s32.totalorder %s828_s14, 0  ;;  %p99_p3 = scmp.eq.s32.totalorder %s678_s15, 1 }
   0x6   : > { %s879_s19 = scalar_select %p39_p0, %s824_s13, %s41_s18  }
   0x7   : > { %p50_p4 = por %p49_p2, %p48_p1  ;;  %p881_p5 = por %p99_p3, %p48_p1 }
   0x8   : > { %p681_p6 = scmp.ge.s32.totalorder %s828_s14, 2 }
   0xa   : > { %127 = sbr.rel (%p681_p6) target bundleno = 37 (0x25), region = 24 }
  0x11   : > { %130 = sbr.rel (!%p50_p4) target bundleno = 37 (0x25), region = 28  ;;  %s132_s21 = sand.u32 (%p50_p4), 1, %s824_s13  }
  0x12   : > { %s727_s22 = sshll.u32 (%p50_p4), %s828_s14, 3  ;;  %s682_s23 = sshll.u32 (%p50_p4), %s132_s21, 8 }
  0x13   : > { %s891_s26 = scalar_lea.vmem (%p50_p4), %s1030_s1, %s727_s22  ;;  %s896_s27 = scalar_lea.vmem (%p50_p4), [#allocation2], %s682_s23 }
  0x14   : > { %v227_v0 = vld [vmem:[%s891_s26] sm:$0xff] (%p50_p4)  ;;  %v229_v1 = vld [vmem:[%s891_s26 + $0x10] sm:$0xff] (%p50_p4) }
  0x15   : > { %v231_v2 = vld [vmem:[%s891_s26 + $0x20] sm:$0xff] (%p50_p4)  ;;  %228 = vst [vmem:[%s896_s27] sm:$0xff] (%p50_p4), %v227_v0  ;;  %230 = vst [vmem:[%s896_s27 + $0x8] sm:$0xff] (%p50_p4), %v229_v1  ;;  %v233_v3 = vld [vmem:[%s891_s26 + $0x30] sm:$0xff] (%p50_p4) }
  0x16   : > { %232 = vst [vmem:[%s896_s27 + $0x10] sm:$0xff] (%p50_p4), %v231_v2  ;;  %v235_v4 = vld [vmem:[%s891_s26 + $0x40] sm:$0xff] (%p50_p4)  ;;  %v237_v5 = vld [vmem:[%s891_s26 + $0x50] sm:$0xff] (%p50_p4)  ;;  %234 = vst [vmem:[%s896_s27 + $0x18] sm:$0xff] (%p50_p4), %v233_v3 }
  0x17   : > { %236 = vst [vmem:[%s896_s27 + $0x20] sm:$0xff] (%p50_p4), %v235_v4  ;;  %238 = vst [vmem:[%s896_s27 + $0x28] sm:$0xff] (%p50_p4), %v237_v5  ;;  %v239_v6 = vld [vmem:[%s891_s26 + $0x60] sm:$0xff] (%p50_p4)  ;;  %v241_v7 = vld [vmem:[%s891_s26 + $0x70] sm:$0xff] (%p50_p4) }
  0x18   : > { %v243_v8 = vld [vmem:[%s891_s26 + $0x80] sm:$0xff]  ;;  %240 = vst [vmem:[%s896_s27 + $0x30] sm:$0xff] %v239_v6  ;;  %242 = vst [vmem:[%s896_s27 + $0x38] sm:$0xff] %v241_v7  ;;  %v245_v9 = vld [vmem:[%s891_s26 + $0x90] sm:$0xff] }
  0x19   : > { %244 = vst [vmem:[%s896_s27 + $0x40] sm:$0xff] %v243_v8  ;;  %v247_v10 = vld [vmem:[%s891_s26 + $0xa0] sm:$0xff]  ;;  %v249_v11 = vld [vmem:[%s891_s26 + $0xb0] sm:$0xff]  ;;  %246 = vst [vmem:[%s896_s27 + $0x48] sm:$0xff] %v245_v9 }
  0x1a   : > { %248 = vst [vmem:[%s896_s27 + $0x50] sm:$0xff] %v247_v10  ;;  %250 = vst [vmem:[%s896_s27 + $0x58] sm:$0xff] %v249_v11  ;;  %v251_v12 = vld [vmem:[%s891_s26 + $0xc0] sm:$0xff]  ;;  %v253_v13 = vld [vmem:[%s891_s26 + $0xd0] sm:$0xff] }
  0x1b   : > { %v255_v14 = vld [vmem:[%s891_s26 + $0xe0] sm:$0xff]  ;;  %252 = vst [vmem:[%s896_s27 + $0x60] sm:$0xff] %v251_v12  ;;  %254 = vst [vmem:[%s896_s27 + $0x68] sm:$0xff] %v253_v13  ;;  %v257_v15 = vld [vmem:[%s891_s26 + $0xf0] sm:$0xff] }
  0x1c   : > { %256 = vst [vmem:[%s896_s27 + $0x70] sm:$0xff] %v255_v14  ;;  %v259_v16 = vld [vmem:[%s891_s26 + $0x100] sm:$0xff]  ;;  %v261_v17 = vld [vmem:[%s891_s26 + $0x110] sm:$0xff]  ;;  %258 = vst [vmem:[%s896_s27 + $0x78] sm:$0xff] %v257_v15 }
  0x1d   : > { %260 = vst [vmem:[%s896_s27 + $0x80] sm:$0xff] %v259_v16  ;;  %262 = vst [vmem:[%s896_s27 + $0x88] sm:$0xff] %v261_v17  ;;  %v263_v18 = vld [vmem:[%s891_s26 + $0x120] sm:$0xff]  ;;  %v265_v19 = vld [vmem:[%s891_s26 + $0x130] sm:$0xff] }
  0x1e   : > { %v267_v20 = vld [vmem:[%s891_s26 + $0x140] sm:$0xff]  ;;  %264 = vst [vmem:[%s896_s27 + $0x90] sm:$0xff] %v263_v18  ;;  %266 = vst [vmem:[%s896_s27 + $0x98] sm:$0xff] %v265_v19  ;;  %v269_v21 = vld [vmem:[%s891_s26 + $0x150] sm:$0xff] }
  0x1f   : > { %268 = vst [vmem:[%s896_s27 + $0xa0] sm:$0xff] %v267_v20  ;;  %v271_v22 = vld [vmem:[%s891_s26 + $0x160] sm:$0xff]  ;;  %v273_v23 = vld [vmem:[%s891_s26 + $0x170] sm:$0xff]  ;;  %270 = vst [vmem:[%s896_s27 + $0xa8] sm:$0xff] %v269_v21 }
  0x20   : > { %272 = vst [vmem:[%s896_s27 + $0xb0] sm:$0xff] %v271_v22  ;;  %274 = vst [vmem:[%s896_s27 + $0xb8] sm:$0xff] %v273_v23  ;;  %v275_v24 = vld [vmem:[%s891_s26 + $0x180] sm:$0xff]  ;;  %v277_v25 = vld [vmem:[%s891_s26 + $0x190] sm:$0xff] }
  0x21   : > { %v279_v26 = vld [vmem:[%s891_s26 + $0x1a0] sm:$0xff]  ;;  %276 = vst [vmem:[%s896_s27 + $0xc0] sm:$0xff] %v275_v24  ;;  %278 = vst [vmem:[%s896_s27 + $0xc8] sm:$0xff] %v277_v25  ;;  %v281_v27 = vld [vmem:[%s891_s26 + $0x1b0] sm:$0xff] }
  0x22   : > { %280 = vst [vmem:[%s896_s27 + $0xd0] sm:$0xff] %v279_v26  ;;  %v283_v28 = vld [vmem:[%s891_s26 + $0x1c0] sm:$0xff]  ;;  %v285_v29 = vld [vmem:[%s891_s26 + $0x1d0] sm:$0xff]  ;;  %282 = vst [vmem:[%s896_s27 + $0xd8] sm:$0xff] %v281_v27 }
  0x23   : > { %284 = vst [vmem:[%s896_s27 + $0xe0] sm:$0xff] %v283_v28  ;;  %286 = vst [vmem:[%s896_s27 + $0xe8] sm:$0xff] %v285_v29  ;;  %v287_v30 = vld [vmem:[%s891_s26 + $0x1e0] sm:$0xff]  ;;  %v289_v31 = vld [vmem:[%s891_s26 + $0x1f0] sm:$0xff] }
  0x24   : > { %288 = vst [vmem:[%s896_s27 + $0xf0] sm:$0xff] %v287_v30  ;;  %290 = vst [vmem:[%s896_s27 + $0xf8] sm:$0xff] %v289_v31 }
  0x25 PF: > { %p685_p7 = scmp.ge.s32.totalorder %s828_s14, 1  ;;  %p295_p8 = scmp.lt.s32.totalorder %s828_s14, 3 }
  0x27   : > { %p296_p9 = pnand %p685_p7, %p295_p8 }
  0x28   : > { %s302_s28 = sand.u32 (!%p296_p9), 1, %s820_s12   ;;  %v805_v32 = vld [vmem:[%s1029_s0 + $0x4] ss:$8 sps:$4 sm:$0xff] (!%p296_p9)   ;;  %v830_v33 = vmov (!%p296_p9), 0   ;;  %v803_v4 = vld [vmem:[%s1029_s0] ss:$8 sps:$4 sm:$0xff] (!%p296_p9)  }
  0x29   : > { %299 = sbr.rel (%p296_p9) target bundleno = 334 (0x14e), region = 66  ;;  %s686_s29 = sshll.u32 (!%p296_p9), %s302_s28, 8  ;;  %754 = vset.pattern.permute.xlu0 (!%p296_p9), %v830_v33  ;;  %v360_v34 = vld [vmem:[%s1031_s2] sm:$0xff] (!%p296_p9)  ;;  %v361_v35 = vld [vmem:[%s1031_s2 + $0x8] sm:$0xff] (!%p296_p9)  ;;  %574 = vmatprep.mubr.bf16.mxu0 (!%p296_p9), %v805_v32 }
  0x2a   : > { %364 = vperm.xlu0 (!%p296_p9), %754, %v360_v34   ;;  %s973_s9 = scalar_lea.vmem (!%p296_p9), [#allocation2], %s686_s29  ;;  %s687_s17 = sshll.u32 (!%p296_p9), %s302_s28, 5 }
  0x2b   : > { %v755_v36 = vld [vmem:[%s973_s9 + $0x4] ss:$8 sps:$4 sm:$0xff] (!%p296_p9)   ;;  %v757_v37 = vld [vmem:[%s973_s9] ss:$8 sps:$4 sm:$0xff] (!%p296_p9)   ;;  %v758_v38 = vld [vmem:[%s973_s9 + $0x14] ss:$8 sps:$4 sm:$0xff] (!%p296_p9)  }
  0x2c   : > { %542 = vmatprep.subr.bf16.mxu0 (!%p296_p9), %v755_v36  ;;  %v760_v39 = vld [vmem:[%s973_s9 + $0x10] ss:$8 sps:$4 sm:$0xff] (!%p296_p9)   ;;  %v761_v40 = vld [vmem:[%s973_s9 + $0x24] ss:$8 sps:$4 sm:$0xff] (!%p296_p9)   ;;  %v763_v41 = vld [vmem:[%s973_s9 + $0x20] ss:$8 sps:$4 sm:$0xff] (!%p296_p9)  }
  0x2d   : > { %543 = vmatpush1.bf16.msra.mxu0 (!%p296_p9), %v757_v37  ;;  %v764_v42 = vld [vmem:[%s973_s9 + $0x34] ss:$8 sps:$4 sm:$0xff] (!%p296_p9)   ;;  %v766_v43 = vld [vmem:[%s973_s9 + $0x30] ss:$8 sps:$4 sm:$0xff] (!%p296_p9)   ;;  %v767_v44 = vld [vmem:[%s973_s9 + $0x44] ss:$8 sps:$4 sm:$0xff] (!%p296_p9)  }
  0x2e   : > { %369 = vperm.xlu0 (!%p296_p9), %754, %v361_v35   ;;  %544 = vmatprep.subr.bf16.mxu0 (!%p296_p9), %v758_v38  ;;  %v769_v45 = vld [vmem:[%s973_s9 + $0x40] ss:$8 sps:$4 sm:$0xff] (!%p296_p9)   ;;  %v770_v46 = vld [vmem:[%s973_s9 + $0x54] ss:$8 sps:$4 sm:$0xff] (!%p296_p9)   ;;  %v772_v47 = vld [vmem:[%s973_s9 + $0x50] ss:$8 sps:$4 sm:$0xff] (!%p296_p9)  }
  0x2f   : > { %v773_v48 = vld [vmem:[%s973_s9 + $0x64] ss:$8 sps:$4 sm:$0xff] (!%p296_p9)   ;;  %v775_v49 = vld [vmem:[%s973_s9 + $0x60] ss:$8 sps:$4 sm:$0xff] (!%p296_p9)   ;;  %v776_v50 = vld [vmem:[%s973_s9 + $0x74] ss:$8 sps:$4 sm:$0xff] (!%p296_p9)  }
  0x30   : > { %v778_v51 = vld [vmem:[%s973_s9 + $0x70] ss:$8 sps:$4 sm:$0xff]   ;;  %v779_v52 = vld [vmem:[%s973_s9 + $0x84] ss:$8 sps:$4 sm:$0xff]   ;;  %v781_v53 = vld [vmem:[%s973_s9 + $0x80] ss:$8 sps:$4 sm:$0xff]  }
  0x31   : > { %545 = vmatpush1.bf16.msra.mxu0 %v760_v39  ;;  %v782_v54 = vld [vmem:[%s973_s9 + $0x94] ss:$8 sps:$4 sm:$0xff]   ;;  %v784_v55 = vld [vmem:[%s973_s9 + $0x90] ss:$8 sps:$4 sm:$0xff]   ;;  %v785_v56 = vld [vmem:[%s973_s9 + $0xa4] ss:$8 sps:$4 sm:$0xff]  }
  0x32   : > { %546 = vmatprep.subr.bf16.mxu0 %v761_v40  ;;  %v787_v57 = vld [vmem:[%s973_s9 + $0xa0] ss:$8 sps:$4 sm:$0xff]   ;;  %v788_v58 = vld [vmem:[%s973_s9 + $0xb4] ss:$8 sps:$4 sm:$0xff]   ;;  %v790_v59 = vld [vmem:[%s973_s9 + $0xb0] ss:$8 sps:$4 sm:$0xff]  }
  0x33   : > { %v791_v60 = vld [vmem:[%s973_s9 + $0xc4] ss:$8 sps:$4 sm:$0xff]   ;;  %v793_v61 = vld [vmem:[%s973_s9 + $0xc0] ss:$8 sps:$4 sm:$0xff]   ;;  %v794_v62 = vld [vmem:[%s973_s9 + $0xd4] ss:$8 sps:$4 sm:$0xff]  }
  0x34   : > { %v796_v63 = vld [vmem:[%s973_s9 + $0xd0] ss:$8 sps:$4 sm:$0xff]   ;;  %v797_v0 = vld [vmem:[%s973_s9 + $0xe4] ss:$8 sps:$4 sm:$0xff]   ;;  %v799_v1 = vld [vmem:[%s973_s9 + $0xe0] ss:$8 sps:$4 sm:$0xff]  }
  0x35   : > { %547 = vmatpush1.bf16.msra.mxu0 %v763_v41  ;;  %v800_v2 = vld [vmem:[%s973_s9 + $0xf4] ss:$8 sps:$4 sm:$0xff]   ;;  %v802_v3 = vld [vmem:[%s973_s9 + $0xf0] ss:$8 sps:$4 sm:$0xff]   ;;  %s323_s18 = scalar_lea.vmem [#allocation3], %s687_s17  ;;  %s728_s12 = sshll.u32 (%p881_p5), %s678_s15, 4 }
  0x36   : > { %548 = vmatprep.subr.bf16.mxu0 %v764_v42  ;;  %s598_s23 = scalar_lea.vmem (%p881_p5), %s1032_s3, %s728_s12 }
  0x39   : > { %549 = vmatpush1.bf16.msra.mxu0 %v766_v43 }
  0x3a   : > { %550 = vmatprep.subr.bf16.mxu0 %v767_v44 }
  0x3d   : > { %551 = vmatpush1.bf16.msra.mxu0 %v769_v45 }
  0x3e   : > { %552 = vmatprep.subr.bf16.mxu0 %v770_v46 }
  0x41   : > { %553 = vmatpush1.bf16.msra.mxu0 %v772_v47 }
  0x42   : > { %554 = vmatprep.subr.bf16.mxu0 %v773_v48 }
  0x45   : > { %555 = vmatpush1.bf16.msra.mxu0 %v775_v49 }
  0x46   : > { %556 = vmatprep.subr.bf16.mxu0 %v776_v50 }
  0x49   : > { %557 = vmatpush1.bf16.msra.mxu0 %v778_v51 }
  0x4a   : > { %558 = vmatprep.subr.bf16.mxu0 %v779_v52 }
  0x4d   : > { %559 = vmatpush1.bf16.msra.mxu0 %v781_v53 }
  0x4e   : > { %560 = vmatprep.subr.bf16.mxu0 %v782_v54 }
  0x51   : > { %561 = vmatpush1.bf16.msra.mxu0 %v784_v55 }
  0x52   : > { %562 = vmatprep.subr.bf16.mxu0 %v785_v56 }
  0x55   : > { %563 = vmatpush1.bf16.msra.mxu0 %v787_v57 }
  0x56   : > { %564 = vmatprep.subr.bf16.mxu0 %v788_v58 }
  0x59   : > { %565 = vmatpush1.bf16.msra.mxu0 %v790_v59 }
  0x5a   : > { %566 = vmatprep.subr.bf16.mxu0 %v791_v60 }
  0x5d   : > { %567 = vmatpush1.bf16.msra.mxu0 %v793_v61 }
  0x5e   : > { %568 = vmatprep.subr.bf16.mxu0 %v794_v62 }
  0x61   : > { %569 = vmatpush1.bf16.msra.mxu0 %v796_v63 }
  0x62   : > { %570 = vmatprep.subr.bf16.mxu0 %v797_v0 }
  0x65   : > { %571 = vmatpush1.bf16.msra.mxu0 %v799_v1 }
  0x66   : > { %572 = vmatprep.subr.bf16.mxu0 %v800_v2 }
  0x69   : > { %573 = vmatpush1.bf16.msra.mxu0 %v802_v3 }
  0x6c   : > { %575 = vmatmul.mubr.bf16.vlgmr.msra.gmra.mrb[0].mxu0 %v803_v4 }
  0xa9   : > { %v365_v5 = vpop.permute.xlu0 %364 }
  0xad   : > { %v370_v9 = vpop.permute.xlu0 %369 }
 0x13f   : > { %v576_v6 = vpop.f32.mrb[0].mxu0  ;;  %595 = sbr.rel (!%p881_p5) target bundleno = 334 (0x14e), region = 74 }
 0x140   : > { %v577_v7 = vadd.f32 %v576_v6, %v365_v5  ;;  %v578_v8 = vpop.f32.mrb[1].mxu0 }
 0x141   : > { %v579_v10 = vadd.f32 %v578_v8, %v365_v5  ;;  %v580_v11 = vpop.f32.mrb[2].mxu0 }
 0x142   : > { %585 = vst [vmem:[%s323_s18] sm:$0xff] %v577_v7  ;;  %v581_v12 = vadd.f32 %v580_v11, %v370_v9  ;;  %v582_v13 = vpop.f32.mrb[3].mxu0 }
 0x143   : > { %586 = vst [vmem:[%s323_s18 + $0x8] sm:$0xff] %v579_v10  ;;  %v583_v14 = vadd.f32 %v582_v13, %v370_v9 }
 0x144   : > { %587 = vst [vmem:[%s323_s18 + $0x10] sm:$0xff] %v581_v12 }
 0x145   : > { %588 = vst [vmem:[%s323_s18 + $0x18] sm:$0xff] %v583_v14 }
 0x149   : > { %v611_v15 = vld [vmem:[%s323_s18] sm:$0xff] }
 0x14a   : > { %v613_v16 = vld [vmem:[%s323_s18 + $0x8] sm:$0xff]  ;;  %612 = vst [vmem:[%s598_s23] sm:$0xff] %v611_v15 }
 0x14b   : > { %v615_v17 = vld [vmem:[%s323_s18 + $0x10] sm:$0xff]  ;;  %614 = vst [vmem:[%s598_s23 + $0x8] sm:$0xff] %v613_v16 }
 0x14c   : > { %v617_v18 = vld [vmem:[%s323_s18 + $0x18] sm:$0xff]  ;;  %616 = vst [vmem:[%s598_s23 + $0x20] sm:$0xff] %v615_v17 }
 0x14d   : > { %618 = vst [vmem:[%s598_s23 + $0x28] sm:$0xff] %v617_v18 }
 0x14e PF: > { %p10_p10 = scmp.ge.s32.totalorder %s868_s16, 4   ;;  %s1034_s12 = smov %s824_s13 }
 0x14f   : > { %s1035_s13 = smov %s879_s19  ;;  %s1036_s14 = smov %s868_s16 }
 0x150   :  { %12 = sbr.rel (!%p10_p10) target bundleno = 2 (0x2), region = 128 }

// kernel: _forward_impl.21
= control target key start
LH: loop header
LB: loop body
LE: loop exit
PB: predicated region body
PF: predicated region fallthrough
CT: control target
= control target key end

     0   :  { %v197_v0 = vmov 0.0   ;;  %vm198_vm0 = vmmov 0   ;;  %v199_v2 = vmov 0   ;;  %s259_s1 = inlined_call_operand.vmem [shape: bf16[128,128], index: 1, kind: input, shape index: {}]   ;;  %s260_s2 = inlined_call_operand.vmem [shape: f32[16,1], index: 2, kind: input, shape index: {}]   ;;  %s261_s0 = inlined_call_operand.vmem [shape: bf16[16,128], index: 0, kind: input, shape index: {}]   ;;  %s262_s3 = inlined_call_operand.vmem [shape: f32[16,128], index: 3, kind: output, shape index: {}]  }
   0x1   :  { %164 = vmatprep.subr.bf16.mxu0 %v197_v0  ;;  %v188_v1 = vld [vmem:[%s259_s1] sm:$0xff]   ;;  %180 = vmatprep.mubr.msk.bf16.mxu0 %vm198_vm0, %v197_v0  ;;  %v189_v3 = vld [vmem:[%s259_s1 + $0x8] sm:$0xff]   ;;  %v190_v4 = vld [vmem:[%s259_s1 + $0x10] sm:$0xff]  }
   0x2   :  { %187 = vset.pattern.permute.xlu0 %v199_v2  ;;  %165 = vmatpush3.bf16.msra.mxu0 %v188_v1  ;;  %v33_v5 = vld [vmem:[%s260_s2] sm:$0xff]  ;;  %v191_v6 = vld [vmem:[%s259_s1 + $0x18] sm:$0xff]   ;;  %v34_v7 = vld [vmem:[%s260_s2 + $0x8] sm:$0xff] }
   0x3   :  { %166 = vmatprep.subr.bf16.mxu0 %v197_v0  ;;  %37 = vperm.xlu0 %187, %v33_v5   ;;  %v192_v8 = vld [vmem:[%s259_s1 + $0x20] sm:$0xff]   ;;  %v193_v9 = vld [vmem:[%s259_s1 + $0x28] sm:$0xff]   ;;  %v194_v10 = vld [vmem:[%s259_s1 + $0x30] sm:$0xff]  }
   0x4   :  { %v195_v11 = vld [vmem:[%s259_s1 + $0x38] sm:$0xff]   ;;  %v196_v12 = vld [vmem:[%s261_s0] sm:$0xff]  }
   0x6   :  { %167 = vmatpush3.bf16.msra.mxu0 %v189_v3 }
   0x7   :  { %168 = vmatprep.subr.bf16.mxu0 %v197_v0  ;;  %42 = vperm.xlu0 %187, %v34_v7  }
   0xa   :  { %169 = vmatpush3.bf16.msra.mxu0 %v190_v4 }
   0xb   :  { %170 = vmatprep.subr.bf16.mxu0 %v197_v0 }
   0xe   :  { %171 = vmatpush3.bf16.msra.mxu0 %v191_v6 }
   0xf   :  { %172 = vmatprep.subr.bf16.mxu0 %v197_v0 }
  0x12   :  { %173 = vmatpush3.bf16.msra.mxu0 %v192_v8 }
  0x13   :  { %174 = vmatprep.subr.bf16.mxu0 %v197_v0 }
  0x16   :  { %175 = vmatpush3.bf16.msra.mxu0 %v193_v9 }
  0x17   :  { %176 = vmatprep.subr.bf16.mxu0 %v197_v0 }
  0x1a   :  { %177 = vmatpush3.bf16.msra.mxu0 %v194_v10 }
  0x1b   :  { %178 = vmatprep.subr.bf16.mxu0 %v197_v0 }
  0x1e   :  { %179 = vmatpush3.bf16.msra.mxu0 %v195_v11 }
  0x21   :  { %181 = vmatmul.mubr.bf16.vlgmr.msra.gmra.mrb[0].mxu0 %v196_v12 }
  0x82   :  { %v38_v13 = vpop.permute.xlu0 %37 }
  0x86   :  { %v43_v17 = vpop.permute.xlu0 %42 }
  0xf4   :  { %v133_v14 = vpop.f32.mrb[0].mxu0 }
  0xf5   :  { %v134_v15 = vadd.f32 %v133_v14, %v38_v13  ;;  %v182_v16 = vpop.f32.mrb[1].mxu0 }
  0xf6   :  { %v136_v18 = vpop.f32.mrb[2].mxu0 }
  0xf7   :  { %140 = vst [vmem:[%s262_s3] sm:$0xff] %v134_v15  ;;  %v137_v19 = vadd.f32 %v136_v18, %v43_v17  ;;  %v183_v20 = vpop.f32.mrb[3].mxu0 }
  0xf9   :  { %141 = vst [vmem:[%s262_s3 + $0x8] sm:$0xff] %v137_v19 }

// kernel: _forward_impl.22
= control target key start
LH: loop header
LB: loop body
LE: loop exit
PB: predicated region body
PF: predicated region fallthrough
CT: control target
= control target key end

     0   :  { %vm12_vm0 = vcmask 523264   ;;  %s131_s0 = inlined_call_operand.vmem [shape: f32[32,64], index: 0, kind: input, shape index: {}]   ;;  %s132_s1 = inlined_call_operand.vmem [shape: f32[32,64], index: 1, kind: output, shape index: {}]  }
   0x1   :  { %v8_v0 = vld [vmem:[%s131_s0] sm:$0xff]  ;;  %v10_v1 = vld [vmem:[%s131_s0 + $0x10] sm:$0xff]  ;;  %v9_v2 = vld [vmem:[%s131_s0 + $0x8] sm:$0xff] }
   0x2   :  { %v13_v3 = vsel %vm12_vm0, %v8_v0, 0.0  ;;  %v19_v4 = vsel %vm12_vm0, %v10_v1, 0.0  ;;  %v11_v5 = vld [vmem:[%s131_s0 + $0x18] sm:$0xff]  ;;  %v16_v6 = vsel %vm12_vm0, %v9_v2, 0.0 }
   0x3   :  { %14 = vadd.xlane.f32.xlu0 %v13_v3  ;;  %20 = vadd.xlane.f32.xlu1 %v19_v4  ;;  %v22_v7 = vsel %vm12_vm0, %v11_v5, 0.0 }
   0x7   :  { %17 = vadd.xlane.f32.xlu0 %v16_v6  ;;  %23 = vadd.xlane.f32.xlu1 %v22_v7 }
  0x90   :  { %v15_v8 = vpop.xlane.xlu0 %14  ;;  %v21_v9 = vpop.xlane.xlu1 %20 }
  0x91   :  { %v25_v10 = vmul.f32 0.015625, %v15_v8  ;;  %v27_v11 = vmul.f32 0.015625, %v21_v9 }
  0x93   :  { %v29_v12 = vsub.f32 %v8_v0, %v25_v10  ;;  %v31_v13 = vsub.f32 %v10_v1, %v27_v11 }
  0x94   :  { %v18_v14 = vpop.xlane.xlu0 %17  ;;  %v24_v15 = vpop.xlane.xlu1 %23 }
  0x95   :  { %v26_v16 = vmul.f32 0.015625, %v18_v14  ;;  %v28_v17 = vmul.f32 0.015625, %v24_v15  ;;  %v33_v18 = vmul.f32 %v29_v12, %v29_v12  ;;  %v35_v19 = vmul.f32 %v31_v13, %v31_v13 }
  0x97   :  { %v30_v20 = vsub.f32 %v9_v2, %v26_v16  ;;  %v32_v21 = vsub.f32 %v11_v5, %v28_v17  ;;  %v37_v22 = vsel %vm12_vm0, %v33_v18, 0.0  ;;  %v43_v23 = vsel %vm12_vm0, %v35_v19, 0.0 }
  0x98   :  { %38 = vadd.xlane.f32.xlu0 %v37_v22 }
  0x99   :  { %v34_v24 = vmul.f32 %v30_v20, %v30_v20  ;;  %v36_v25 = vmul.f32 %v32_v21, %v32_v21 }
  0x9b   :  { %v40_v26 = vsel %vm12_vm0, %v34_v24, 0.0  ;;  %v46_v27 = vsel %vm12_vm0, %v36_v25, 0.0 }
  0x9c   :  { %44 = vadd.xlane.f32.xlu0 %v43_v23  ;;  %41 = vadd.xlane.f32.xlu1 %v40_v26 }
  0xa0   :  { %47 = vadd.xlane.f32.xlu1 %v46_v27 }
 0x125   :  { %v39_v28 = vpop.xlane.xlu0 %38 }
 0x126   :  { %v49_v29 = vmul.f32 0.015625, %v39_v28 }
 0x128   :  { %v53_v30 = vadd.f32 1e-05, %v49_v29 }
 0x129   :  { %v42_v31 = vpop.xlane.xlu1 %41  ;;  %v45_v32 = vpop.xlane.xlu0 %44 }
 0x12a   :  { %77 = vrsqrt.f32 %v53_v30  ;;  %v50_v33 = vmul.f32 0.015625, %v42_v31  ;;  %v51_v34 = vmul.f32 0.015625, %v45_v32 }
 0x12c   :  { %v54_v35 = vadd.f32 1e-05, %v50_v33  ;;  %v55_v36 = vadd.f32 1e-05, %v51_v34 }
 0x12d   :  { %v48_v37 = vpop.xlane.xlu1 %47 }
 0x12e   :  { %79 = vrsqrt.f32 %v54_v35  ;;  %v52_v38 = vmul.f32 0.015625, %v48_v37 }
 0x12f   :  { %81 = vrsqrt.f32 %v55_v36 }
 0x130   :  { %v56_v39 = vadd.f32 1e-05, %v52_v38 }
 0x132   :  { %83 = vrsqrt.f32 %v56_v39 }
 0x134   :  { %v78_v40 = vpop.eup %77 }
 0x135   :  { %v61_v41 = vmul.f32 %v78_v40, %v29_v12 }
 0x137   :  { %v65_v42 = vmax.f32 %v61_v41, 0.0 }
 0x138   :  { %v80_v43 = vpop.eup %79 }
 0x139   :  { %v82_v44 = vpop.eup %81  ;;  %69 = vst.msk [vmem:[%s132_s1] sm:$0xff] %vm12_vm0, %v65_v42  ;;  %v62_v45 = vmul.f32 %v80_v43, %v30_v20 }
 0x13a   :  { %v63_v46 = vmul.f32 %v82_v44, %v31_v13 }
 0x13b   :  { %v66_v47 = vmax.f32 %v62_v45, 0.0 }
 0x13c   :  { %v84_v48 = vpop.eup %83  ;;  %v67_v49 = vmax.f32 %v63_v46, 0.0 }
 0x13d   :  { %70 = vst.msk [vmem:[%s132_s1 + $0x8] sm:$0xff] %vm12_vm0, %v66_v47  ;;  %v64_v50 = vmul.f32 %v84_v48, %v32_v21 }
 0x13e   :  { %71 = vst.msk [vmem:[%s132_s1 + $0x10] sm:$0xff] %vm12_vm0, %v67_v49 }
 0x13f   :  { %v68_v51 = vmax.f32 %v64_v50, 0.0 }
 0x141   :  { %72 = vst.msk [vmem:[%s132_s1 + $0x18] sm:$0xff] %vm12_vm0, %v68_v51 }

// kernel: _forward_impl.23
= control target key start
LH: loop header
LB: loop body
LE: loop exit
PB: predicated region body
PF: predicated region fallthrough
CT: control target
= control target key end

     0   :  { %v337_v1 = vmov 0   ;;  %s442_s1 = inlined_call_operand.vmem [shape: bf16[256,128], index: 1, kind: input, shape index: {}]   ;;  %s443_s0 = inlined_call_operand.vmem [shape: bf16[32,256], index: 0, kind: input, shape index: {}]   ;;  %s444_s2 = inlined_call_operand.vmem [shape: f32[32,1], index: 2, kind: input, shape index: {}]   ;;  %s445_s3 = inlined_call_operand.vmem [shape: f32[32,128], index: 3, kind: output, shape index: {}]  }
   0x1   :  { %v315_v0 = vld [vmem:[%s442_s1 + $0x40] sm:$0xff]   ;;  %314 = vset.pattern.permute.xlu1 %v337_v1  ;;  %313 = vset.pattern.permute.xlu0 %v337_v1  ;;  %v317_v3 = vld [vmem:[%s442_s1 + $0x48] sm:$0xff]   ;;  %v319_v5 = vld [vmem:[%s442_s1 + $0x50] sm:$0xff]  }
   0x2   :  { %v316_v2 = vld [vmem:[%s442_s1] sm:$0xff]   ;;  %268 = vmatprep.subr.bf16.mxu0 %v315_v0  ;;  %296 = vmatprep.subr.bf16.mxu1 %v315_v0  ;;  %v318_v4 = vld [vmem:[%s442_s1 + $0x8] sm:$0xff]   ;;  %v320_v6 = vld [vmem:[%s442_s1 + $0x10] sm:$0xff]  }
   0x3   :  { %269 = vmatpush3.bf16.msra.mxu0 %v316_v2  ;;  %304 = vmatpush3.bf16.msra.mxu1 %v316_v2  ;;  %v321_v7 = vld [vmem:[%s442_s1 + $0x58] sm:$0xff]   ;;  %v323_v9 = vld [vmem:[%s442_s1 + $0x60] sm:$0xff]   ;;  %v325_v11 = vld [vmem:[%s442_s1 + $0x68] sm:$0xff]  }
   0x4   :  { %270 = vmatprep.subr.bf16.mxu0 %v317_v3  ;;  %297 = vmatprep.subr.bf16.mxu1 %v317_v3  ;;  %v322_v8 = vld [vmem:[%s442_s1 + $0x18] sm:$0xff]   ;;  %v324_v10 = vld [vmem:[%s442_s1 + $0x20] sm:$0xff]   ;;  %v326_v14 = vld [vmem:[%s442_s1 + $0x28] sm:$0xff]  }
   0x5   :  { %v333_v12 = vld [vmem:[%s443_s0 + $0x4] ss:$8 sps:$4 sm:$0xff]   ;;  %v336_v13 = vld [vmem:[%s443_s0 + $0x14] ss:$8 sps:$4 sm:$0xff]   ;;  %v331_v23 = vld [vmem:[%s443_s0] ss:$8 sps:$4 sm:$0xff]  }
   0x6   :  { %v53_v15 = vld [vmem:[%s444_s2 + $0x10] sm:$0xff]  ;;  %v51_v16 = vld [vmem:[%s444_s2] sm:$0xff]  ;;  %223 = vmatprep.mubr.bf16.mxu0 %v333_v12  ;;  %231 = vmatprep.mubr.bf16.mxu1 %v336_v13  ;;  %v54_v19 = vld [vmem:[%s444_s2 + $0x18] sm:$0xff] }
   0x7   :  { %271 = vmatpush3.bf16.msra.mxu0 %v318_v4  ;;  %305 = vmatpush3.bf16.msra.mxu1 %v318_v4  ;;  %v327_v17 = vld [vmem:[%s442_s1 + $0x70] sm:$0xff]   ;;  %v52_v20 = vld [vmem:[%s444_s2 + $0x8] sm:$0xff]  ;;  %v329_v21 = vld [vmem:[%s442_s1 + $0x78] sm:$0xff]  }
   0x8   :  { %272 = vmatprep.subr.bf16.mxu0 %v319_v5  ;;  %298 = vmatprep.subr.bf16.mxu1 %v319_v5  ;;  %v328_v18 = vld [vmem:[%s442_s1 + $0x30] sm:$0xff]   ;;  %v330_v22 = vld [vmem:[%s442_s1 + $0x38] sm:$0xff]  }
   0x9   :  { %67 = vperm.xlu1 %314, %v53_v15   ;;  %57 = vperm.xlu0 %313, %v51_v16   ;;  %v334_v24 = vld [vmem:[%s443_s0 + $0x10] ss:$8 sps:$4 sm:$0xff]  }
   0xb   :  { %273 = vmatpush3.bf16.msra.mxu0 %v320_v6  ;;  %306 = vmatpush3.bf16.msra.mxu1 %v320_v6 }
   0xc   :  { %274 = vmatprep.subr.bf16.mxu0 %v321_v7  ;;  %299 = vmatprep.subr.bf16.mxu1 %v321_v7 }
   0xd   :  { %72 = vperm.xlu1 %314, %v54_v19   ;;  %62 = vperm.xlu0 %313, %v52_v20  }
   0xf   :  { %275 = vmatpush3.bf16.msra.mxu0 %v322_v8  ;;  %307 = vmatpush3.bf16.msra.mxu1 %v322_v8 }
  0x10   :  { %276 = vmatprep.subr.bf16.mxu0 %v323_v9  ;;  %300 = vmatprep.subr.bf16.mxu1 %v323_v9 }
  0x13   :  { %277 = vmatpush3.bf16.msra.mxu0 %v324_v10  ;;  %308 = vmatpush3.bf16.msra.mxu1 %v324_v10 }
  0x14   :  { %278 = vmatprep.subr.bf16.mxu0 %v325_v11  ;;  %301 = vmatprep.subr.bf16.mxu1 %v325_v11 }
  0x17   :  { %279 = vmatpush3.bf16.msra.mxu0 %v326_v14  ;;  %309 = vmatpush3.bf16.msra.mxu1 %v326_v14 }
  0x18   :  { %280 = vmatprep.subr.bf16.mxu0 %v327_v17  ;;  %302 = vmatprep.subr.bf16.mxu1 %v327_v17 }
  0x1b   :  { %281 = vmatpush3.bf16.msra.mxu0 %v328_v18  ;;  %310 = vmatpush3.bf16.msra.mxu1 %v328_v18 }
  0x1c   :  { %282 = vmatprep.subr.bf16.mxu0 %v329_v21  ;;  %303 = vmatprep.subr.bf16.mxu1 %v329_v21 }
  0x1f   :  { %283 = vmatpush3.bf16.msra.mxu0 %v330_v22  ;;  %311 = vmatpush3.bf16.msra.mxu1 %v330_v22 }
  0x22   :  { %224 = vmatmul.mubr.bf16.vlgmr.msra.gmra.mrb[0].mxu0 %v331_v23  ;;  %232 = vmatmul.mubr.bf16.vlgmr.msra.gmra.mrb[0].mxu1 %v334_v24 }
  0x88   :  { %v68_v25 = vpop.permute.xlu1 %67  ;;  %v58_v26 = vpop.permute.xlu0 %57 }
  0x8c   :  { %v73_v41 = vpop.permute.xlu1 %72  ;;  %v63_v42 = vpop.permute.xlu0 %62 }
  0xf5   :  { %v284_v27 = vpop.f32.mrb[0].mxu0  ;;  %v290_v28 = vpop.f32.mrb[0].mxu1 }
  0xf6   :  { %v285_v29 = vpop.f32.mrb[1].mxu0  ;;  %v291_v30 = vpop.f32.mrb[1].mxu1 }
  0xf7   :  { %v286_v31 = vadd.f32 %v285_v29, %v284_v27  ;;  %v292_v32 = vadd.f32 %v291_v30, %v290_v28  ;;  %v287_v33 = vpop.f32.mrb[2].mxu0  ;;  %v293_v34 = vpop.f32.mrb[2].mxu1 }
  0xf8   :  { %v288_v35 = vpop.f32.mrb[3].mxu0  ;;  %v294_v36 = vpop.f32.mrb[3].mxu1 }
  0xf9   :  { %v226_v37 = vadd.f32 %v286_v31, %v58_v26  ;;  %v234_v38 = vadd.f32 %v292_v32, %v68_v25  ;;  %v289_v39 = vadd.f32 %v288_v35, %v287_v33  ;;  %v295_v40 = vadd.f32 %v294_v36, %v293_v34 }
  0xfb   :  { %240 = vst [vmem:[%s445_s3] sm:$0xff] %v226_v37  ;;  %242 = vst [vmem:[%s445_s3 + $0x10] sm:$0xff] %v234_v38  ;;  %v229_v43 = vadd.f32 %v289_v39, %v63_v42  ;;  %v237_v44 = vadd.f32 %v295_v40, %v73_v41 }
  0xfd   :  { %241 = vst [vmem:[%s445_s3 + $0x8] sm:$0xff] %v229_v43  ;;  %243 = vst [vmem:[%s445_s3 + $0x18] sm:$0xff] %v237_v44 }

// kernel: _forward_impl.24
= control target key start
LH: loop header
LB: loop body
LE: loop exit
PB: predicated region body
PF: predicated region fallthrough
CT: control target
= control target key end

     0   :  { %vm16_vm0 = vcmask 130048   ;;  %s279_s0 = inlined_call_operand.vmem [shape: f32[64,16], index: 0, kind: input, shape index: {}]   ;;  %s280_s1 = inlined_call_operand.vmem [shape: f32[64,16], index: 1, kind: output, shape index: {}]  }
   0x1   :  { %v8_v0 = vld [vmem:[%s279_s0] sm:$0xff]  ;;  %v10_v1 = vld [vmem:[%s279_s0 + $0x10] sm:$0xff]  ;;  %v9_v2 = vld [vmem:[%s279_s0 + $0x8] sm:$0xff] }
   0x2   :  { %v17_v3 = vsel %vm16_vm0, %v8_v0, 0.0  ;;  %v23_v4 = vsel %vm16_vm0, %v10_v1, 0.0  ;;  %v11_v5 = vld [vmem:[%s279_s0 + $0x18] sm:$0xff]  ;;  %v20_v6 = vsel %vm16_vm0, %v9_v2, 0.0  ;;  %v12_v8 = vld [vmem:[%s279_s0 + $0x20] sm:$0xff]  ;;  %v13_v9 = vld [vmem:[%s279_s0 + $0x28] sm:$0xff] }
   0x3   :  { %18 = vadd.xlane.f32.xlu0 %v17_v3  ;;  %24 = vadd.xlane.f32.xlu1 %v23_v4  ;;  %v26_v7 = vsel %vm16_vm0, %v11_v5, 0.0  ;;  %v29_v10 = vsel %vm16_vm0, %v12_v8, 0.0  ;;  %v32_v11 = vsel %vm16_vm0, %v13_v9, 0.0  ;;  %v14_v12 = vld [vmem:[%s279_s0 + $0x30] sm:$0xff]  ;;  %v15_v13 = vld [vmem:[%s279_s0 + $0x38] sm:$0xff] }
   0x4   :  { %v35_v14 = vsel %vm16_vm0, %v14_v12, 0.0  ;;  %v38_v15 = vsel %vm16_vm0, %v15_v13, 0.0 }
   0x7   :  { %21 = vadd.xlane.f32.xlu0 %v20_v6  ;;  %27 = vadd.xlane.f32.xlu1 %v26_v7 }
   0xb   :  { %30 = vadd.xlane.f32.xlu0 %v29_v10  ;;  %33 = vadd.xlane.f32.xlu1 %v32_v11 }
   0xf   :  { %36 = vadd.xlane.f32.xlu0 %v35_v14  ;;  %39 = vadd.xlane.f32.xlu1 %v38_v15 }
  0x90   :  { %v19_v16 = vpop.xlane.xlu0 %18  ;;  %v25_v17 = vpop.xlane.xlu1 %24 }
  0x91   :  { %v41_v18 = vmul.f32 0.0625, %v19_v16  ;;  %v43_v19 = vmul.f32 0.0625, %v25_v17 }
  0x93   :  { %v199_v20 = vsub.f32 %v8_v0, %v41_v18  ;;  %v201_v21 = vsub.f32 %v10_v1, %v43_v19 }
  0x94   :  { %v22_v22 = vpop.xlane.xlu0 %21  ;;  %v28_v23 = vpop.xlane.xlu1 %27 }
  0x95   :  { %v42_v24 = vmul.f32 0.0625, %v22_v22  ;;  %v44_v25 = vmul.f32 0.0625, %v28_v23  ;;  %v57_v26 = vmul.f32 %v199_v20, %v199_v20  ;;  %v59_v27 = vmul.f32 %v201_v21, %v201_v21 }
  0x97   :  { %v207_v28 = vsub.f32 %v9_v2, %v42_v24  ;;  %v209_v29 = vsub.f32 %v11_v5, %v44_v25  ;;  %v65_v30 = vsel %vm16_vm0, %v57_v26, 0.0  ;;  %v71_v33 = vsel %vm16_vm0, %v59_v27, 0.0 }
  0x98   :  { %66 = vadd.xlane.f32.xlu0 %v65_v30  ;;  %v31_v31 = vpop.xlane.xlu0 %30  ;;  %v34_v32 = vpop.xlane.xlu1 %33 }
  0x99   :  { %v45_v34 = vmul.f32 0.0625, %v31_v31  ;;  %v46_v35 = vmul.f32 0.0625, %v34_v32  ;;  %v58_v36 = vmul.f32 %v207_v28, %v207_v28  ;;  %v60_v37 = vmul.f32 %v209_v29, %v209_v29 }
  0x9b   :  { %v217_v38 = vsub.f32 %v12_v8, %v45_v34  ;;  %v219_v39 = vsub.f32 %v13_v9, %v46_v35  ;;  %v68_v40 = vsel %vm16_vm0, %v58_v36, 0.0  ;;  %v74_v43 = vsel %vm16_vm0, %v60_v37, 0.0 }
  0x9c   :  { %72 = vadd.xlane.f32.xlu0 %v71_v33  ;;  %69 = vadd.xlane.f32.xlu1 %v68_v40  ;;  %v37_v41 = vpop.xlane.xlu0 %36  ;;  %v40_v42 = vpop.xlane.xlu1 %39 }
  0x9d   :  { %v47_v44 = vmul.f32 0.0625, %v37_v41  ;;  %v48_v45 = vmul.f32 0.0625, %v40_v42  ;;  %v61_v46 = vmul.f32 %v217_v38, %v217_v38  ;;  %v62_v47 = vmul.f32 %v219_v39, %v219_v39 }
  0x9f   :  { %v227_v48 = vsub.f32 %v14_v12, %v47_v44  ;;  %v229_v49 = vsub.f32 %v15_v13, %v48_v45  ;;  %v77_v50 = vsel %vm16_vm0, %v61_v46, 0.0  ;;  %v80_v51 = vsel %vm16_vm0, %v62_v47, 0.0 }
  0xa0   :  { %75 = vadd.xlane.f32.xlu1 %v74_v43  ;;  %78 = vadd.xlane.f32.xlu0 %v77_v50 }
  0xa1   :  { %v63_v52 = vmul.f32 %v227_v48, %v227_v48  ;;  %v64_v53 = vmul.f32 %v229_v49, %v229_v49 }
  0xa3   :  { %v83_v54 = vsel %vm16_vm0, %v63_v52, 0.0  ;;  %v86_v55 = vsel %vm16_vm0, %v64_v53, 0.0 }
  0xa4   :  { %81 = vadd.xlane.f32.xlu1 %v80_v51  ;;  %84 = vadd.xlane.f32.xlu0 %v83_v54 }
  0xa8   :  { %87 = vadd.xlane.f32.xlu1 %v86_v55 }
 0x125   :  { %v67_v56 = vpop.xlane.xlu0 %66 }
 0x126   :  { %v89_v57 = vmul.f32 0.0625, %v67_v56 }
 0x128   :  { %v97_v58 = vadd.f32 1e-05, %v89_v57 }
 0x129   :  { %v70_v59 = vpop.xlane.xlu1 %69  ;;  %v73_v60 = vpop.xlane.xlu0 %72 }
 0x12a   :  { %141 = vrsqrt.f32 %v97_v58  ;;  %v90_v61 = vmul.f32 0.0625, %v70_v59  ;;  %v91_v62 = vmul.f32 0.0625, %v73_v60 }
 0x12c   :  { %v98_v63 = vadd.f32 1e-05, %v90_v61  ;;  %v99_v0 = vadd.f32 1e-05, %v91_v62 }
 0x12d   :  { %v76_v1 = vpop.xlane.xlu1 %75  ;;  %v79_v2 = vpop.xlane.xlu0 %78 }
 0x12e   :  { %143 = vrsqrt.f32 %v98_v63  ;;  %v92_v3 = vmul.f32 0.0625, %v76_v1  ;;  %v93_v4 = vmul.f32 0.0625, %v79_v2 }
 0x12f   :  { %145 = vrsqrt.f32 %v99_v0 }
 0x130   :  { %v100_v5 = vadd.f32 1e-05, %v92_v3  ;;  %v101_v6 = vadd.f32 1e-05, %v93_v4 }
 0x131   :  { %v82_v7 = vpop.xlane.xlu1 %81  ;;  %v85_v8 = vpop.xlane.xlu0 %84 }
 0x132   :  { %147 = vrsqrt.f32 %v100_v5  ;;  %v94_v9 = vmul.f32 0.0625, %v82_v7  ;;  %v95_v10 = vmul.f32 0.0625, %v85_v8 }
 0x133   :  { %149 = vrsqrt.f32 %v101_v6 }
 0x134   :  { %v142_v11 = vpop.eup %141  ;;  %v102_v12 = vadd.f32 1e-05, %v94_v9  ;;  %v103_v13 = vadd.f32 1e-05, %v95_v10 }
 0x135   :  { %v113_v14 = vmul.f32 %v142_v11, %v199_v20  ;;  %v88_v15 = vpop.xlane.xlu1 %87 }
 0x136   :  { %151 = vrsqrt.f32 %v102_v12  ;;  %v96_v16 = vmul.f32 0.0625, %v88_v15 }
 0x137   :  { %v121_v17 = vmax.f32 %v113_v14, 0.0  ;;  %153 = vrsqrt.f32 %v103_v13 }
 0x138   :  { %v144_v18 = vpop.eup %143  ;;  %v104_v19 = vadd.f32 1e-05, %v96_v16 }
 0x139   :  { %v146_v22 = vpop.eup %145  ;;  %129 = vst.msk [vmem:[%s280_s1] sm:$0xff] %vm16_vm0, %v121_v17  ;;  %v114_v23 = vmul.f32 %v144_v18, %v207_v28 }
 0x13a   :  { %v115_v24 = vmul.f32 %v146_v22, %v201_v21  ;;  %155 = vrsqrt.f32 %v104_v19 }
 0x13b   :  { %v122_v25 = vmax.f32 %v114_v23, 0.0 }
 0x13c   :  { %v148_v20 = vpop.eup %147  ;;  %v123_v26 = vmax.f32 %v115_v24, 0.0 }
 0x13d   :  { %v150_v27 = vpop.eup %149  ;;  %130 = vst.msk [vmem:[%s280_s1 + $0x8] sm:$0xff] %vm16_vm0, %v122_v25  ;;  %v116_v30 = vmul.f32 %v148_v20, %v209_v29 }
 0x13e   :  { %131 = vst.msk [vmem:[%s280_s1 + $0x10] sm:$0xff] %vm16_vm0, %v123_v26  ;;  %v117_v28 = vmul.f32 %v150_v27, %v217_v38 }
 0x13f   :  { %v124_v21 = vmax.f32 %v116_v30, 0.0 }
 0x140   :  { %v152_v31 = vpop.eup %151  ;;  %v125_v32 = vmax.f32 %v117_v28, 0.0 }
 0x141   :  { %v154_v33 = vpop.eup %153  ;;  %132 = vst.msk [vmem:[%s280_s1 + $0x18] sm:$0xff] %vm16_vm0, %v124_v21  ;;  %v118_v34 = vmul.f32 %v152_v31, %v219_v39 }
 0x142   :  { %133 = vst.msk [vmem:[%s280_s1 + $0x20] sm:$0xff] %vm16_vm0, %v125_v32  ;;  %v119_v29 = vmul.f32 %v154_v33, %v227_v48 }
 0x143   :  { %v126_v35 = vmax.f32 %v118_v34, 0.0 }
 0x144   :  { %v156_v36 = vpop.eup %155  ;;  %v127_v37 = vmax.f32 %v119_v29, 0.0 }
 0x145   :  { %134 = vst.msk [vmem:[%s280_s1 + $0x28] sm:$0xff] %vm16_vm0, %v126_v35  ;;  %v120_v38 = vmul.f32 %v156_v36, %v229_v49 }
 0x146   :  { %135 = vst.msk [vmem:[%s280_s1 + $0x30] sm:$0xff] %vm16_vm0, %v127_v37 }
 0x147   :  { %v128_v39 = vmax.f32 %v120_v38, 0.0 }
 0x149   :  { %136 = vst.msk [vmem:[%s280_s1 + $0x38] sm:$0xff] %vm16_vm0, %v128_v39 }

// kernel: _forward_impl.25
= control target key start
LH: loop header
LB: loop body
LE: loop exit
PB: predicated region body
PF: predicated region fallthrough
CT: control target
= control target key end

     0   :  { %v500_v1 = vmov 0   ;;  %s635_s1 = inlined_call_operand.vmem [shape: bf16[384,128], index: 1, kind: input, shape index: {}]   ;;  %s636_s0 = inlined_call_operand.vmem [shape: bf16[32,384], index: 0, kind: input, shape index: {}]   ;;  %s637_s2 = inlined_call_operand.vmem [shape: f32[32,1], index: 2, kind: input, shape index: {}]   ;;  %s638_s3 = inlined_call_operand.vmem [shape: f32[32,128], index: 3, kind: output, shape index: {}]  }
   0x1   :  { %v468_v0 = vld [vmem:[%s635_s1 + $0x40] sm:$0xff]   ;;  %466 = vset.pattern.permute.xlu0 %v500_v1  ;;  %467 = vset.pattern.permute.xlu1 %v500_v1  ;;  %v470_v3 = vld [vmem:[%s635_s1 + $0x48] sm:$0xff]   ;;  %v473_v6 = vld [vmem:[%s635_s1 + $0x50] sm:$0xff]  }
   0x2   :  { %v469_v2 = vld [vmem:[%s635_s1] sm:$0xff]   ;;  %407 = vmatprep.subr.bf16.mxu0 %v468_v0  ;;  %v472_v5 = vld [vmem:[%s635_s1 + $0x8] sm:$0xff]   ;;  %v475_v8 = vld [vmem:[%s635_s1 + $0x10] sm:$0xff]  }
   0x3   :  { %408 = vmatpush3.bf16.msra.mxu0 %v469_v2  ;;  %v471_v4 = vld [vmem:[%s635_s1 + $0x80] sm:$0xff]   ;;  %v474_v7 = vld [vmem:[%s635_s1 + $0x88] sm:$0xff]   ;;  %v476_v9 = vld [vmem:[%s635_s1 + $0x58] sm:$0xff]  }
   0x4   :  { %409 = vmatprep.subr.bf16.mxu0 %v470_v3  ;;  %445 = vmatprep.subr.bf16.mxu1 %v471_v4  ;;  %v477_v10 = vld [vmem:[%s635_s1 + $0x90] sm:$0xff]   ;;  %v478_v11 = vld [vmem:[%s635_s1 + $0x18] sm:$0xff]   ;;  %v479_v12 = vld [vmem:[%s635_s1 + $0x60] sm:$0xff]  }
   0x5   :  { %446 = vmatpush3.bf16.msra.mxu1 %v471_v4  ;;  %v480_v13 = vld [vmem:[%s635_s1 + $0x98] sm:$0xff]   ;;  %v481_v14 = vld [vmem:[%s635_s1 + $0x20] sm:$0xff]   ;;  %v482_v16 = vld [vmem:[%s635_s1 + $0x68] sm:$0xff]  }
   0x6   :  { %447 = vmatprep.subr.bf16.mxu1 %v474_v7  ;;  %v483_v15 = vld [vmem:[%s635_s1 + $0xa0] sm:$0xff]   ;;  %v484_v17 = vld [vmem:[%s635_s1 + $0x28] sm:$0xff]   ;;  %v485_v19 = vld [vmem:[%s635_s1 + $0x70] sm:$0xff]  }
   0x7   :  { %410 = vmatpush3.bf16.msra.mxu0 %v472_v5  ;;  %v486_v18 = vld [vmem:[%s635_s1 + $0xa8] sm:$0xff]   ;;  %v487_v20 = vld [vmem:[%s635_s1 + $0x30] sm:$0xff]   ;;  %v488_v21 = vld [vmem:[%s635_s1 + $0x78] sm:$0xff]  }
   0x8   :  { %411 = vmatprep.subr.bf16.mxu0 %v473_v6  ;;  %v489_v22 = vld [vmem:[%s635_s1 + $0xb0] sm:$0xff]   ;;  %v490_v24 = vld [vmem:[%s635_s1 + $0x38] sm:$0xff]   ;;  %v71_v27 = vld [vmem:[%s637_s2] sm:$0xff] }
   0x9   :  { %448 = vmatpush3.bf16.msra.mxu1 %v474_v7  ;;  %v493_v23 = vld [vmem:[%s636_s0 + $0x4] ss:$12 sps:$4 sm:$0xff]   ;;  %v495_v25 = vld [vmem:[%s636_s0 + $0x8] ss:$12 sps:$4 sm:$0xff]   ;;  %v494_v26 = vld [vmem:[%s635_s1 + $0xb8] sm:$0xff]   ;;  %77 = vperm.xlu0 %466, %v71_v27  }
   0xa   :  { %449 = vmatprep.subr.bf16.mxu1 %v477_v10  ;;  %303 = vmatprep.mubr.bf16.mxu0 %v493_v23  ;;  %v73_v28 = vld [vmem:[%s637_s2 + $0x10] sm:$0xff]  ;;  %v491_v29 = vld [vmem:[%s636_s0] ss:$12 sps:$4 sm:$0xff]   ;;  %v497_v31 = vld [vmem:[%s636_s0 + $0x1c] ss:$12 sps:$4 sm:$0xff]  }
   0xb   :  { %412 = vmatpush3.bf16.msra.mxu0 %v475_v8  ;;  %461 = vmatprep.mubr.bf16.mxu1 %v495_v25  ;;  %v72_v30 = vld [vmem:[%s637_s2 + $0x8] sm:$0xff]  ;;  %v74_v32 = vld [vmem:[%s637_s2 + $0x18] sm:$0xff] }
   0xc   :  { %413 = vmatprep.subr.bf16.mxu0 %v476_v9  ;;  %87 = vperm.xlu1 %467, %v73_v28   ;;  %v496_v33 = vld [vmem:[%s636_s0 + $0x20] ss:$12 sps:$4 sm:$0xff]   ;;  %v499_v34 = vld [vmem:[%s636_s0 + $0x18] ss:$12 sps:$4 sm:$0xff]  }
   0xd   :  { %450 = vmatpush3.bf16.msra.mxu1 %v477_v10  ;;  %82 = vperm.xlu0 %466, %v72_v30  }
   0xe   :  { %451 = vmatprep.subr.bf16.mxu1 %v480_v13 }
   0xf   :  { %414 = vmatpush3.bf16.msra.mxu0 %v478_v11 }
  0x10   :  { %415 = vmatprep.subr.bf16.mxu0 %v479_v12  ;;  %92 = vperm.xlu1 %467, %v74_v32  }
  0x11   :  { %452 = vmatpush3.bf16.msra.mxu1 %v480_v13 }
  0x12   :  { %453 = vmatprep.subr.bf16.mxu1 %v483_v15 }
  0x13   :  { %416 = vmatpush3.bf16.msra.mxu0 %v481_v14 }
  0x14   :  { %417 = vmatprep.subr.bf16.mxu0 %v482_v16 }
  0x15   :  { %454 = vmatpush3.bf16.msra.mxu1 %v483_v15 }
  0x16   :  { %455 = vmatprep.subr.bf16.mxu1 %v486_v18 }
  0x17   :  { %418 = vmatpush3.bf16.msra.mxu0 %v484_v17 }
  0x18   :  { %419 = vmatprep.subr.bf16.mxu0 %v485_v19 }
  0x19   :  { %456 = vmatpush3.bf16.msra.mxu1 %v486_v18 }
  0x1a   :  { %457 = vmatprep.subr.bf16.mxu1 %v489_v22 }
  0x1b   :  { %420 = vmatpush3.bf16.msra.mxu0 %v487_v20 }
  0x1c   :  { %421 = vmatprep.subr.bf16.mxu0 %v488_v21 }
  0x1d   :  { %458 = vmatpush3.bf16.msra.mxu1 %v489_v22 }
  0x1e   :  { %459 = vmatprep.subr.bf16.mxu1 %v494_v26 }
  0x1f   :  { %422 = vmatpush3.bf16.msra.mxu0 %v490_v24 }
  0x21   :  { %460 = vmatpush3.bf16.msra.mxu1 %v494_v26 }
  0x22   :  { %304 = vmatmul.mubr.bf16.vlgmr.msra.gmra.mrb[0].mxu0 %v491_v29 }
  0x23   :  { %311 = vmatprep.mubr.bf16.mxu0 %v497_v31 }
  0x24   :  { %462 = vmatmul.mubr.bf16.vlgmr.msra.gmra.mrb[0].mxu1 %v496_v33 }
  0x2a   :  { %312 = vmatmul.mubr.bf16.gmra.mrb[4].mxu0 %v499_v34 }
  0x88   :  { %v78_v35 = vpop.permute.xlu0 %77 }
  0x8b   :  { %v88_v50 = vpop.permute.xlu1 %87 }
  0x8c   :  { %v83_v40 = vpop.permute.xlu0 %82 }
  0x8f   :  { %v93_v59 = vpop.permute.xlu1 %92 }
  0xf5   :  { %v423_v36 = vpop.f32.mrb[0].mxu0 }
  0xf6   :  { %v424_v37 = vpop.f32.mrb[1].mxu0 }
  0xf7   :  { %v425_v38 = vadd.f32 %v424_v37, %v423_v36  ;;  %v426_v39 = vpop.f32.mrb[2].mxu0  ;;  %v463_v42 = vpop.f32.mrb[0].mxu1 }
  0xf8   :  { %v427_v41 = vpop.f32.mrb[3].mxu0  ;;  %v354_v45 = vpop.f32.mrb[1].mxu1 }
  0xf9   :  { %v428_v43 = vadd.f32 %v427_v41, %v426_v39  ;;  %v306_v44 = vadd.f32 %v425_v38, %v78_v35  ;;  %v464_v46 = vpop.f32.mrb[2].mxu1 }
  0xfa   :  { %v357_v49 = vpop.f32.mrb[3].mxu1 }
  0xfb   :  { %v309_v47 = vadd.f32 %v428_v43, %v83_v40  ;;  %v355_v48 = vadd.f32 %v354_v45, %v306_v44 }
  0xfd   :  { %369 = vst [vmem:[%s638_s3] sm:$0xff] %v355_v48  ;;  %v358_v51 = vadd.f32 %v357_v49, %v309_v47  ;;  %v429_v52 = vpop.f32.mrb[4].mxu0 }
  0xfe   :  { %v430_v53 = vpop.f32.mrb[5].mxu0 }
  0xff   :  { %370 = vst [vmem:[%s638_s3 + $0x8] sm:$0xff] %v358_v51  ;;  %v431_v54 = vadd.f32 %v430_v53, %v429_v52  ;;  %v432_v55 = vpop.f32.mrb[6].mxu0 }
 0x100   :  { %v433_v56 = vpop.f32.mrb[7].mxu0 }
 0x101   :  { %v314_v57 = vadd.f32 %v431_v54, %v88_v50  ;;  %v434_v58 = vadd.f32 %v433_v56, %v432_v55 }
 0x103   :  { %v363_v60 = vadd.f32 %v463_v42, %v314_v57  ;;  %v317_v61 = vadd.f32 %v434_v58, %v93_v59 }
 0x105   :  { %371 = vst [vmem:[%s638_s3 + $0x10] sm:$0xff] %v363_v60  ;;  %v366_v62 = vadd.f32 %v464_v46, %v317_v61 }
 0x107   :  { %372 = vst [vmem:[%s638_s3 + $0x18] sm:$0xff] %v366_v62 }

// kernel: _forward_impl.28
= control target key start
LH: loop header
LB: loop body
LE: loop exit
PB: predicated region body
PF: predicated region fallthrough
CT: control target
= control target key end

     0   :  { %vm19_vm0 = vcmask 130048   ;;  %s319_s0 = inlined_call_operand.vmem [shape: f32[64,16], index: 0, kind: input, shape index: {}]   ;;  %s320_s1 = inlined_call_operand.vmem [shape: f32[64,16], index: 1, kind: input, shape index: {}]   ;;  %s321_s2 = inlined_call_operand.vmem [shape: f32[64,16], index: 2, kind: output, shape index: {}]  }
   0x1   :  { %v11_v0 = vld [vmem:[%s319_s0] sm:$0xff]  ;;  %v13_v1 = vld [vmem:[%s319_s0 + $0x10] sm:$0xff]  ;;  %v12_v2 = vld [vmem:[%s319_s0 + $0x8] sm:$0xff] }
   0x2   :  { %v20_v3 = vsel %vm19_vm0, %v11_v0, 0.0  ;;  %v26_v4 = vsel %vm19_vm0, %v13_v1, 0.0  ;;  %v14_v5 = vld [vmem:[%s319_s0 + $0x18] sm:$0xff]  ;;  %v23_v6 = vsel %vm19_vm0, %v12_v2, 0.0  ;;  %v15_v8 = vld [vmem:[%s319_s0 + $0x20] sm:$0xff]  ;;  %v16_v9 = vld [vmem:[%s319_s0 + $0x28] sm:$0xff] }
   0x3   :  { %21 = vadd.xlane.f32.xlu0 %v20_v3  ;;  %27 = vadd.xlane.f32.xlu1 %v26_v4  ;;  %v29_v7 = vsel %vm19_vm0, %v14_v5, 0.0  ;;  %v32_v10 = vsel %vm19_vm0, %v15_v8, 0.0  ;;  %v35_v11 = vsel %vm19_vm0, %v16_v9, 0.0  ;;  %v17_v12 = vld [vmem:[%s319_s0 + $0x30] sm:$0xff]  ;;  %v18_v13 = vld [vmem:[%s319_s0 + $0x38] sm:$0xff] }
   0x4   :  { %v38_v14 = vsel %vm19_vm0, %v17_v12, 0.0  ;;  %v41_v15 = vsel %vm19_vm0, %v18_v13, 0.0 }
   0x7   :  { %24 = vadd.xlane.f32.xlu0 %v23_v6  ;;  %30 = vadd.xlane.f32.xlu1 %v29_v7 }
   0xb   :  { %33 = vadd.xlane.f32.xlu0 %v32_v10  ;;  %36 = vadd.xlane.f32.xlu1 %v35_v11 }
   0xf   :  { %39 = vadd.xlane.f32.xlu0 %v38_v14  ;;  %42 = vadd.xlane.f32.xlu1 %v41_v15 }
  0x90   :  { %v22_v16 = vpop.xlane.xlu0 %21  ;;  %v28_v17 = vpop.xlane.xlu1 %27 }
  0x91   :  { %v44_v18 = vmul.f32 0.0625, %v22_v16  ;;  %v46_v19 = vmul.f32 0.0625, %v28_v17 }
  0x93   :  { %v215_v20 = vsub.f32 %v11_v0, %v44_v18  ;;  %v217_v21 = vsub.f32 %v13_v1, %v46_v19 }
  0x94   :  { %v25_v22 = vpop.xlane.xlu0 %24  ;;  %v31_v23 = vpop.xlane.xlu1 %30 }
  0x95   :  { %v45_v24 = vmul.f32 0.0625, %v25_v22  ;;  %v47_v25 = vmul.f32 0.0625, %v31_v23  ;;  %v60_v26 = vmul.f32 %v215_v20, %v215_v20  ;;  %v62_v27 = vmul.f32 %v217_v21, %v217_v21  ;;  %v125_v22 = vld [vmem:[%s320_s1 + $0x8] sm:$0xff] }
  0x97   :  { %v223_v28 = vsub.f32 %v12_v2, %v45_v24  ;;  %v225_v29 = vsub.f32 %v14_v5, %v47_v25  ;;  %v68_v30 = vsel %vm19_vm0, %v60_v26, 0.0  ;;  %v74_v33 = vsel %vm19_vm0, %v62_v27, 0.0 }
  0x98   :  { %69 = vadd.xlane.f32.xlu0 %v68_v30  ;;  %v34_v31 = vpop.xlane.xlu0 %33  ;;  %v37_v32 = vpop.xlane.xlu1 %36 }
  0x99   :  { %v48_v34 = vmul.f32 0.0625, %v34_v31  ;;  %v49_v35 = vmul.f32 0.0625, %v37_v32  ;;  %v61_v36 = vmul.f32 %v223_v28, %v223_v28  ;;  %v63_v37 = vmul.f32 %v225_v29, %v225_v29  ;;  %v127_v32 = vld [vmem:[%s320_s1 + $0x18] sm:$0xff] }
  0x9b   :  { %v233_v38 = vsub.f32 %v15_v8, %v48_v34  ;;  %v235_v39 = vsub.f32 %v16_v9, %v49_v35  ;;  %v71_v40 = vsel %vm19_vm0, %v61_v36, 0.0  ;;  %v77_v43 = vsel %vm19_vm0, %v63_v37, 0.0 }
  0x9c   :  { %75 = vadd.xlane.f32.xlu0 %v74_v33  ;;  %72 = vadd.xlane.f32.xlu1 %v71_v40  ;;  %v40_v41 = vpop.xlane.xlu0 %39  ;;  %v43_v42 = vpop.xlane.xlu1 %42  ;;  %v129_v40 = vld [vmem:[%s320_s1 + $0x28] sm:$0xff] }
  0x9d   :  { %v50_v44 = vmul.f32 0.0625, %v40_v41  ;;  %v51_v45 = vmul.f32 0.0625, %v43_v42  ;;  %v64_v46 = vmul.f32 %v233_v38, %v233_v38  ;;  %v65_v47 = vmul.f32 %v235_v39, %v235_v39  ;;  %v130_v42 = vld [vmem:[%s320_s1 + $0x30] sm:$0xff] }
  0x9f   :  { %v243_v48 = vsub.f32 %v17_v12, %v50_v44  ;;  %v245_v49 = vsub.f32 %v18_v13, %v51_v45  ;;  %v80_v50 = vsel %vm19_vm0, %v64_v46, 0.0  ;;  %v83_v51 = vsel %vm19_vm0, %v65_v47, 0.0  ;;  %v124_v12 = vld [vmem:[%s320_s1] sm:$0xff]  ;;  %v131_v46 = vld [vmem:[%s320_s1 + $0x38] sm:$0xff] }
  0xa0   :  { %78 = vadd.xlane.f32.xlu1 %v77_v43  ;;  %81 = vadd.xlane.f32.xlu0 %v80_v50 }
  0xa1   :  { %v66_v52 = vmul.f32 %v243_v48, %v243_v48  ;;  %v67_v53 = vmul.f32 %v245_v49, %v245_v49 }
  0xa3   :  { %v86_v54 = vsel %vm19_vm0, %v66_v52, 0.0  ;;  %v89_v55 = vsel %vm19_vm0, %v67_v53, 0.0 }
  0xa4   :  { %84 = vadd.xlane.f32.xlu1 %v83_v51  ;;  %87 = vadd.xlane.f32.xlu0 %v86_v54 }
  0xa8   :  { %90 = vadd.xlane.f32.xlu1 %v89_v55 }
 0x125   :  { %v70_v56 = vpop.xlane.xlu0 %69 }
 0x126   :  { %v92_v57 = vmul.f32 0.0625, %v70_v56 }
 0x128   :  { %v100_v58 = vadd.f32 1e-05, %v92_v57 }
 0x129   :  { %v73_v59 = vpop.xlane.xlu1 %72  ;;  %v76_v60 = vpop.xlane.xlu0 %75 }
 0x12a   :  { %152 = vrsqrt.f32 %v100_v58  ;;  %v93_v61 = vmul.f32 0.0625, %v73_v59  ;;  %v94_v62 = vmul.f32 0.0625, %v76_v60 }
 0x12c   :  { %v101_v63 = vadd.f32 1e-05, %v93_v61  ;;  %v102_v0 = vadd.f32 1e-05, %v94_v62 }
 0x12d   :  { %v79_v1 = vpop.xlane.xlu1 %78  ;;  %v82_v2 = vpop.xlane.xlu0 %81 }
 0x12e   :  { %154 = vrsqrt.f32 %v101_v63  ;;  %v95_v3 = vmul.f32 0.0625, %v79_v1  ;;  %v96_v4 = vmul.f32 0.0625, %v82_v2 }
 0x12f   :  { %156 = vrsqrt.f32 %v102_v0 }
 0x130   :  { %v103_v5 = vadd.f32 1e-05, %v95_v3  ;;  %v104_v6 = vadd.f32 1e-05, %v96_v4 }
 0x131   :  { %v85_v7 = vpop.xlane.xlu1 %84  ;;  %v88_v8 = vpop.xlane.xlu0 %87 }
 0x132   :  { %158 = vrsqrt.f32 %v103_v5  ;;  %v97_v9 = vmul.f32 0.0625, %v85_v7  ;;  %v98_v10 = vmul.f32 0.0625, %v88_v8 }
 0x133   :  { %160 = vrsqrt.f32 %v104_v6 }
 0x134   :  { %v153_v11 = vpop.eup %152  ;;  %v105_v13 = vadd.f32 1e-05, %v97_v9  ;;  %v106_v14 = vadd.f32 1e-05, %v98_v10 }
 0x135   :  { %v116_v15 = vmul.f32 %v153_v11, %v215_v20  ;;  %v91_v16 = vpop.xlane.xlu1 %90  ;;  %v126_v20 = vld [vmem:[%s320_s1 + $0x10] sm:$0xff] }
 0x136   :  { %162 = vrsqrt.f32 %v105_v13  ;;  %v99_v17 = vmul.f32 0.0625, %v91_v16 }
 0x137   :  { %v132_v18 = vadd.f32 %v124_v12, %v116_v15  ;;  %164 = vrsqrt.f32 %v106_v14 }
 0x138   :  { %v155_v19 = vpop.eup %154  ;;  %v107_v23 = vadd.f32 1e-05, %v99_v17 }
 0x139   :  { %v157_v24 = vpop.eup %156  ;;  %140 = vst.msk [vmem:[%s321_s2] sm:$0xff] %vm19_vm0, %v132_v18  ;;  %v117_v25 = vmul.f32 %v155_v19, %v223_v28 }
 0x13a   :  { %v118_v26 = vmul.f32 %v157_v24, %v217_v21  ;;  %166 = vrsqrt.f32 %v107_v23  ;;  %v128_v21 = vld [vmem:[%s320_s1 + $0x20] sm:$0xff] }
 0x13b   :  { %v133_v27 = vadd.f32 %v125_v22, %v117_v25 }
 0x13c   :  { %v159_v30 = vpop.eup %158  ;;  %v134_v31 = vadd.f32 %v126_v20, %v118_v26 }
 0x13d   :  { %v161_v33 = vpop.eup %160  ;;  %141 = vst.msk [vmem:[%s321_s2 + $0x8] sm:$0xff] %vm19_vm0, %v133_v27  ;;  %v119_v28 = vmul.f32 %v159_v30, %v225_v29 }
 0x13e   :  { %142 = vst.msk [vmem:[%s321_s2 + $0x10] sm:$0xff] %vm19_vm0, %v134_v31  ;;  %v120_v34 = vmul.f32 %v161_v33, %v233_v38 }
 0x13f   :  { %v135_v35 = vadd.f32 %v127_v32, %v119_v28 }
 0x140   :  { %v163_v36 = vpop.eup %162  ;;  %v136_v37 = vadd.f32 %v128_v21, %v120_v34 }
 0x141   :  { %v165_v41 = vpop.eup %164  ;;  %143 = vst.msk [vmem:[%s321_s2 + $0x18] sm:$0xff] %vm19_vm0, %v135_v35  ;;  %v121_v29 = vmul.f32 %v163_v36, %v235_v39 }
 0x142   :  { %144 = vst.msk [vmem:[%s321_s2 + $0x20] sm:$0xff] %vm19_vm0, %v136_v37  ;;  %v122_v38 = vmul.f32 %v165_v41, %v243_v48 }
 0x143   :  { %v137_v43 = vadd.f32 %v129_v40, %v121_v29 }
 0x144   :  { %v167_v44 = vpop.eup %166  ;;  %v138_v45 = vadd.f32 %v130_v42, %v122_v38 }
 0x145   :  { %145 = vst.msk [vmem:[%s321_s2 + $0x28] sm:$0xff] %vm19_vm0, %v137_v43  ;;  %v123_v39 = vmul.f32 %v167_v44, %v245_v49 }
 0x146   :  { %146 = vst.msk [vmem:[%s321_s2 + $0x30] sm:$0xff] %vm19_vm0, %v138_v45 }
 0x147   :  { %v139_v47 = vadd.f32 %v131_v46, %v123_v39 }
 0x149   :  { %147 = vst.msk [vmem:[%s321_s2 + $0x38] sm:$0xff] %vm19_vm0, %v139_v47 }

// kernel: _forward_impl.33
= control target key start
LH: loop header
LB: loop body
LE: loop exit
PB: predicated region body
PF: predicated region fallthrough
CT: control target
= control target key end

     0   :  { %v315_v1 = vmov 0   ;;  %s420_s1 = inlined_call_operand.vmem [shape: bf16[128,128], index: 1, kind: input, shape index: {}]   ;;  %s421_s0 = inlined_call_operand.vmem [shape: bf16[64,128], index: 0, kind: input, shape index: {}]   ;;  %s422_s2 = inlined_call_operand.vmem [shape: f32[64,1], index: 2, kind: input, shape index: {}]   ;;  %s423_s3 = inlined_call_operand.vmem [shape: f32[64,128], index: 3, kind: output, shape index: {}]  }
   0x1   :  { %v303_v0 = vld [vmem:[%s420_s1] sm:$0xff]   ;;  %302 = vset.pattern.permute.xlu1 %v315_v1  ;;  %301 = vset.pattern.permute.xlu0 %v315_v1  ;;  %v304_v2 = vld [vmem:[%s420_s1 + $0x8] sm:$0xff]   ;;  %v305_v3 = vld [vmem:[%s420_s1 + $0x10] sm:$0xff]  }
   0x2   :  { %260 = vmatprep.subr.bf16.mxu0 %v303_v0  ;;  %284 = vmatprep.subr.bf16.mxu1 %v303_v0  ;;  %v306_v4 = vld [vmem:[%s420_s1 + $0x18] sm:$0xff]   ;;  %v311_v5 = vld [vmem:[%s421_s0] sm:$0xff]   ;;  %v312_v6 = vld [vmem:[%s421_s0 + $0x10] sm:$0xff]  }
   0x3   :  { %261 = vmatpush3.bf16.msra.mxu0 %v303_v0  ;;  %292 = vmatpush3.bf16.msra.mxu1 %v303_v0  ;;  %v307_v7 = vld [vmem:[%s420_s1 + $0x20] sm:$0xff]   ;;  %v41_v8 = vld [vmem:[%s422_s2 + $0x10] sm:$0xff]  ;;  %v42_v10 = vld [vmem:[%s422_s2 + $0x18] sm:$0xff] }
   0x4   :  { %262 = vmatprep.subr.bf16.mxu0 %v304_v2  ;;  %285 = vmatprep.subr.bf16.mxu1 %v304_v2  ;;  %v39_v9 = vld [vmem:[%s422_s2] sm:$0xff]  ;;  %v40_v11 = vld [vmem:[%s422_s2 + $0x8] sm:$0xff]  ;;  %v309_v15 = vld [vmem:[%s420_s1 + $0x30] sm:$0xff]  }
   0x5   :  { %276 = vmatprep.mubr.bf16.mxu0 %v311_v5  ;;  %280 = vmatprep.mubr.bf16.mxu1 %v312_v6  ;;  %v308_v12 = vld [vmem:[%s420_s1 + $0x28] sm:$0xff]   ;;  %v43_v14 = vld [vmem:[%s422_s2 + $0x20] sm:$0xff]  ;;  %v46_v16 = vld [vmem:[%s422_s2 + $0x38] sm:$0xff] }
   0x6   :  { %59 = vperm.xlu1 %302, %v41_v8   ;;  %49 = vperm.xlu0 %301, %v39_v9   ;;  %v44_v13 = vld [vmem:[%s422_s2 + $0x28] sm:$0xff]  ;;  %v45_v17 = vld [vmem:[%s422_s2 + $0x30] sm:$0xff]  ;;  %v310_v18 = vld [vmem:[%s420_s1 + $0x38] sm:$0xff]  }
   0x7   :  { %263 = vmatpush3.bf16.msra.mxu0 %v304_v2  ;;  %293 = vmatpush3.bf16.msra.mxu1 %v304_v2  ;;  %v313_v19 = vld [vmem:[%s421_s0 + $0x8] sm:$0xff]   ;;  %v314_v20 = vld [vmem:[%s421_s0 + $0x18] sm:$0xff]  }
   0x8   :  { %264 = vmatprep.subr.bf16.mxu0 %v305_v3  ;;  %286 = vmatprep.subr.bf16.mxu1 %v305_v3 }
   0xa   :  { %64 = vperm.xlu1 %302, %v42_v10   ;;  %54 = vperm.xlu0 %301, %v40_v11  }
   0xb   :  { %265 = vmatpush3.bf16.msra.mxu0 %v305_v3  ;;  %294 = vmatpush3.bf16.msra.mxu1 %v305_v3 }
   0xc   :  { %266 = vmatprep.subr.bf16.mxu0 %v306_v4  ;;  %287 = vmatprep.subr.bf16.mxu1 %v306_v4 }
   0xe   :  { %74 = vperm.xlu1 %302, %v44_v13   ;;  %69 = vperm.xlu0 %301, %v43_v14  }
   0xf   :  { %267 = vmatpush3.bf16.msra.mxu0 %v306_v4  ;;  %295 = vmatpush3.bf16.msra.mxu1 %v306_v4 }
  0x10   :  { %268 = vmatprep.subr.bf16.mxu0 %v307_v7  ;;  %288 = vmatprep.subr.bf16.mxu1 %v307_v7 }
  0x12   :  { %84 = vperm.xlu1 %302, %v46_v16   ;;  %79 = vperm.xlu0 %301, %v45_v17  }
  0x13   :  { %269 = vmatpush3.bf16.msra.mxu0 %v307_v7  ;;  %296 = vmatpush3.bf16.msra.mxu1 %v307_v7 }
  0x14   :  { %270 = vmatprep.subr.bf16.mxu0 %v308_v12  ;;  %289 = vmatprep.subr.bf16.mxu1 %v308_v12 }
  0x17   :  { %271 = vmatpush3.bf16.msra.mxu0 %v308_v12  ;;  %297 = vmatpush3.bf16.msra.mxu1 %v308_v12 }
  0x18   :  { %272 = vmatprep.subr.bf16.mxu0 %v309_v15  ;;  %290 = vmatprep.subr.bf16.mxu1 %v309_v15 }
  0x1b   :  { %273 = vmatpush3.bf16.msra.mxu0 %v309_v15  ;;  %298 = vmatpush3.bf16.msra.mxu1 %v309_v15 }
  0x1c   :  { %274 = vmatprep.subr.bf16.mxu0 %v310_v18  ;;  %291 = vmatprep.subr.bf16.mxu1 %v310_v18 }
  0x1f   :  { %275 = vmatpush3.bf16.msra.mxu0 %v310_v18  ;;  %299 = vmatpush3.bf16.msra.mxu1 %v310_v18 }
  0x22   :  { %277 = vmatmul.mubr.bf16.vlgmr.msra.gmra.mrb[0].mxu0 %v313_v19  ;;  %281 = vmatmul.mubr.bf16.vlgmr.msra.gmra.mrb[0].mxu1 %v314_v20 }
  0x85   :  { %v60_v21 = vpop.permute.xlu1 %59  ;;  %v50_v22 = vpop.permute.xlu0 %49 }
  0x89   :  { %v65_v23 = vpop.permute.xlu1 %64  ;;  %v55_v24 = vpop.permute.xlu0 %54 }
  0x8d   :  { %v75_v25 = vpop.permute.xlu1 %74  ;;  %v70_v26 = vpop.permute.xlu0 %69 }
  0x91   :  { %v85_v27 = vpop.permute.xlu1 %84  ;;  %v80_v28 = vpop.permute.xlu0 %79 }
  0xf5   :  { %v278_v29 = vpop.f32.mrb[0].mxu0  ;;  %v282_v30 = vpop.f32.mrb[0].mxu1 }
  0xf6   :  { %v202_v31 = vadd.f32 %v278_v29, %v60_v21  ;;  %v218_v32 = vadd.f32 %v282_v30, %v80_v28  ;;  %v193_v33 = vpop.f32.mrb[1].mxu0  ;;  %v209_v34 = vpop.f32.mrb[1].mxu1 }
  0xf7   :  { %v194_v35 = vadd.f32 %v193_v33, %v50_v22  ;;  %v210_v36 = vadd.f32 %v209_v34, %v70_v26  ;;  %v279_v37 = vpop.f32.mrb[2].mxu0  ;;  %v283_v38 = vpop.f32.mrb[2].mxu1 }
  0xf8   :  { %226 = vst [vmem:[%s423_s3 + $0x10] sm:$0xff] %v202_v31  ;;  %230 = vst [vmem:[%s423_s3 + $0x30] sm:$0xff] %v218_v32  ;;  %v205_v39 = vadd.f32 %v279_v37, %v65_v23  ;;  %v221_v40 = vadd.f32 %v283_v38, %v85_v27  ;;  %v196_v41 = vpop.f32.mrb[3].mxu0  ;;  %v212_v42 = vpop.f32.mrb[3].mxu1 }
  0xf9   :  { %224 = vst [vmem:[%s423_s3] sm:$0xff] %v194_v35  ;;  %228 = vst [vmem:[%s423_s3 + $0x20] sm:$0xff] %v210_v36  ;;  %v197_v43 = vadd.f32 %v196_v41, %v55_v24  ;;  %v213_v44 = vadd.f32 %v212_v42, %v75_v25 }
  0xfa   :  { %227 = vst [vmem:[%s423_s3 + $0x18] sm:$0xff] %v205_v39  ;;  %231 = vst [vmem:[%s423_s3 + $0x38] sm:$0xff] %v221_v40 }
  0xfb   :  { %225 = vst [vmem:[%s423_s3 + $0x8] sm:$0xff] %v197_v43  ;;  %229 = vst [vmem:[%s423_s3 + $0x28] sm:$0xff] %v213_v44 }

// kernel: _forward_impl.35
= control target key start
LH: loop header
LB: loop body
LE: loop exit
PB: predicated region body
PF: predicated region fallthrough
CT: control target
= control target key end

     0   :  { %v229_v1 = vmov 0   ;;  %s304_s1 = inlined_call_operand.vmem [shape: bf16[128,128], index: 1, kind: input, shape index: {}]   ;;  %s305_s0 = inlined_call_operand.vmem [shape: bf16[32,128], index: 0, kind: input, shape index: {}]   ;;  %s306_s2 = inlined_call_operand.vmem [shape: f32[32,1], index: 2, kind: input, shape index: {}]   ;;  %s307_s3 = inlined_call_operand.vmem [shape: f32[32,128], index: 3, kind: output, shape index: {}]  }
   0x1   :  { %v219_v0 = vld [vmem:[%s304_s1] sm:$0xff]   ;;  %218 = vset.pattern.permute.xlu1 %v229_v1  ;;  %217 = vset.pattern.permute.xlu0 %v229_v1  ;;  %v220_v2 = vld [vmem:[%s304_s1 + $0x8] sm:$0xff]   ;;  %v221_v3 = vld [vmem:[%s304_s1 + $0x10] sm:$0xff]  }
   0x2   :  { %196 = vmatprep.subr.bf16.mxu0 %v219_v0  ;;  %v222_v4 = vld [vmem:[%s304_s1 + $0x18] sm:$0xff]   ;;  %v227_v5 = vld [vmem:[%s305_s0] sm:$0xff]   ;;  %v37_v6 = vld [vmem:[%s306_s2 + $0x10] sm:$0xff] }
   0x3   :  { %197 = vmatpush3.bf16.msra.mxu0 %v219_v0  ;;  %212 = vmatprep.mubr.bf16.mxu0 %v227_v5  ;;  %v35_v7 = vld [vmem:[%s306_s2] sm:$0xff]  ;;  %v38_v9 = vld [vmem:[%s306_s2 + $0x18] sm:$0xff]  ;;  %v36_v10 = vld [vmem:[%s306_s2 + $0x8] sm:$0xff] }
   0x4   :  { %198 = vmatprep.subr.bf16.mxu0 %v220_v2  ;;  %51 = vperm.xlu1 %218, %v37_v6   ;;  %v223_v8 = vld [vmem:[%s304_s1 + $0x20] sm:$0xff]   ;;  %v224_v11 = vld [vmem:[%s304_s1 + $0x28] sm:$0xff]   ;;  %v225_v12 = vld [vmem:[%s304_s1 + $0x30] sm:$0xff]  }
   0x5   :  { %41 = vperm.xlu0 %217, %v35_v7   ;;  %v226_v13 = vld [vmem:[%s304_s1 + $0x38] sm:$0xff]   ;;  %v228_v14 = vld [vmem:[%s305_s0 + $0x8] sm:$0xff]  }
   0x7   :  { %199 = vmatpush3.bf16.msra.mxu0 %v220_v2 }
   0x8   :  { %200 = vmatprep.subr.bf16.mxu0 %v221_v3  ;;  %56 = vperm.xlu1 %218, %v38_v9  }
   0x9   :  { %46 = vperm.xlu0 %217, %v36_v10  }
   0xb   :  { %201 = vmatpush3.bf16.msra.mxu0 %v221_v3 }
   0xc   :  { %202 = vmatprep.subr.bf16.mxu0 %v222_v4 }
   0xf   :  { %203 = vmatpush3.bf16.msra.mxu0 %v222_v4 }
  0x10   :  { %204 = vmatprep.subr.bf16.mxu0 %v223_v8 }
  0x13   :  { %205 = vmatpush3.bf16.msra.mxu0 %v223_v8 }
  0x14   :  { %206 = vmatprep.subr.bf16.mxu0 %v224_v11 }
  0x17   :  { %207 = vmatpush3.bf16.msra.mxu0 %v224_v11 }
  0x18   :  { %208 = vmatprep.subr.bf16.mxu0 %v225_v12 }
  0x1b   :  { %209 = vmatpush3.bf16.msra.mxu0 %v225_v12 }
  0x1c   :  { %210 = vmatprep.subr.bf16.mxu0 %v226_v13 }
  0x1f   :  { %211 = vmatpush3.bf16.msra.mxu0 %v226_v13 }
  0x22   :  { %213 = vmatmul.mubr.bf16.vlgmr.msra.gmra.mrb[0].mxu0 %v228_v14 }
  0x83   :  { %v52_v15 = vpop.permute.xlu1 %51 }
  0x84   :  { %v42_v16 = vpop.permute.xlu0 %41 }
  0x87   :  { %v57_v20 = vpop.permute.xlu1 %56 }
  0x88   :  { %v47_v23 = vpop.permute.xlu0 %46 }
  0xf5   :  { %v214_v17 = vpop.f32.mrb[0].mxu0 }
  0xf6   :  { %v162_v18 = vadd.f32 %v214_v17, %v52_v15  ;;  %v153_v19 = vpop.f32.mrb[1].mxu0 }
  0xf7   :  { %v154_v21 = vadd.f32 %v153_v19, %v42_v16  ;;  %v215_v22 = vpop.f32.mrb[2].mxu0 }
  0xf8   :  { %170 = vst [vmem:[%s307_s3 + $0x10] sm:$0xff] %v162_v18  ;;  %v165_v24 = vadd.f32 %v215_v22, %v57_v20  ;;  %v156_v25 = vpop.f32.mrb[3].mxu0 }
  0xf9   :  { %168 = vst [vmem:[%s307_s3] sm:$0xff] %v154_v21  ;;  %v157_v26 = vadd.f32 %v156_v25, %v47_v23 }
  0xfa   :  { %171 = vst [vmem:[%s307_s3 + $0x18] sm:$0xff] %v165_v24 }
  0xfb   :  { %169 = vst [vmem:[%s307_s3 + $0x8] sm:$0xff] %v157_v26 }

// kernel: _forward_impl.37
= control target key start
LH: loop header
LB: loop body
LE: loop exit
PB: predicated region body
PF: predicated region fallthrough
CT: control target
= control target key end

     0   :  { %s1331_s12 = smov 0   ;;  %s1333_s13 = smov 0   ;;  %s1611_s0 = inlined_call_operand.vmem [shape: bf16[16,512], index: 0, kind: input, shape index: {}]   ;;  %s1612_s1 = inlined_call_operand.vmem [shape: bf16[512,512], index: 1, kind: input, shape index: {}]   ;;  %s1613_s2 = inlined_call_operand.vmem [shape: f32[16,1], index: 2, kind: input, shape index: {}]   ;;  %s1614_s3 = inlined_call_operand.vmem [shape: f32[16,512], index: 3, kind: output, shape index: {}]  }
   0x1   :  { %s1335_s14 = smov 0  }
   0x2 LB: > { %s1057_s15 = sadd.s32 4294967295, %s1308_s14   ;;  %s1348_s16 = sadd.s32 1, %s1308_s14   ;;  %s1308_s14 = sphi %s1335_s14, %s1618_s14   ;;  %s1304_s13 = sphi %s1333_s13, %s1617_s13   ;;  %s1300_s12 = sphi %s1331_s12, %s1616_s12  }
   0x3   : > { %s38_s17 = ssub.s32 %s1308_s14, %s1348_s16  ;;  %s41_s18 = sadd.s32 1, %s1304_s13 }
   0x4   : > { %p39_p0 = scmp.eq.s32.totalorder %s38_s17, 0  ;;  %p48_p1 = scmp.ne.s32.totalorder %s1304_s13, %s1300_s12 }
   0x5   : > { %p49_p2 = scmp.eq.s32.totalorder %s1308_s14, 0  ;;  %p99_p3 = scmp.eq.s32.totalorder %s1057_s15, 1 }
   0x6   : > { %s1359_s19 = scalar_select %p39_p0, %s1304_s13, %s41_s18  }
   0x7   : > { %p50_p4 = por %p49_p2, %p48_p1  ;;  %p1361_p5 = por %p99_p3, %p48_p1 }
   0x8   : > { %p1060_p6 = scmp.ge.s32.totalorder %s1308_s14, 2 }
   0xa   : > { %127 = sbr.rel (%p1060_p6) target bundleno = 53 (0x35), region = 24 }
  0x11   : > { %130 = sbr.rel (!%p50_p4) target bundleno = 53 (0x35), region = 28  ;;  %s132_s21 = sand.u32 (%p50_p4), 1, %s1304_s13  }
  0x12   : > { %s1140_s22 = sshll.u32 (%p50_p4), %s1308_s14, 3  ;;  %s1061_s23 = sshll.u32 (%p50_p4), %s132_s21, 9 }
  0x13   : > { %s1371_s26 = scalar_lea.vmem (%p50_p4), %s1612_s1, %s1140_s22  ;;  %s1376_s27 = scalar_lea.vmem (%p50_p4), [#allocation2], %s1061_s23 }
  0x14   : > { %v291_v0 = vld [vmem:[%s1371_s26] sm:$0xff] (%p50_p4)  ;;  %v293_v1 = vld [vmem:[%s1371_s26 + $0x10] sm:$0xff] (%p50_p4) }
  0x15   : > { %v295_v2 = vld [vmem:[%s1371_s26 + $0x20] sm:$0xff] (%p50_p4)  ;;  %292 = vst [vmem:[%s1376_s27] sm:$0xff] (%p50_p4), %v291_v0  ;;  %294 = vst [vmem:[%s1376_s27 + $0x8] sm:$0xff] (%p50_p4), %v293_v1  ;;  %v297_v3 = vld [vmem:[%s1371_s26 + $0x30] sm:$0xff] (%p50_p4) }
  0x16   : > { %296 = vst [vmem:[%s1376_s27 + $0x10] sm:$0xff] (%p50_p4), %v295_v2  ;;  %v299_v4 = vld [vmem:[%s1371_s26 + $0x40] sm:$0xff] (%p50_p4)  ;;  %v301_v5 = vld [vmem:[%s1371_s26 + $0x50] sm:$0xff] (%p50_p4)  ;;  %298 = vst [vmem:[%s1376_s27 + $0x18] sm:$0xff] (%p50_p4), %v297_v3 }
  0x17   : > { %300 = vst [vmem:[%s1376_s27 + $0x20] sm:$0xff] (%p50_p4), %v299_v4  ;;  %302 = vst [vmem:[%s1376_s27 + $0x28] sm:$0xff] (%p50_p4), %v301_v5  ;;  %v303_v6 = vld [vmem:[%s1371_s26 + $0x60] sm:$0xff] (%p50_p4)  ;;  %v305_v7 = vld [vmem:[%s1371_s26 + $0x70] sm:$0xff] (%p50_p4) }
  0x18   : > { %v307_v8 = vld [vmem:[%s1371_s26 + $0x80] sm:$0xff]  ;;  %304 = vst [vmem:[%s1376_s27 + $0x30] sm:$0xff] %v303_v6  ;;  %306 = vst [vmem:[%s1376_s27 + $0x38] sm:$0xff] %v305_v7  ;;  %v309_v9 = vld [vmem:[%s1371_s26 + $0x90] sm:$0xff] }
  0x19   : > { %308 = vst [vmem:[%s1376_s27 + $0x40] sm:$0xff] %v307_v8  ;;  %v311_v10 = vld [vmem:[%s1371_s26 + $0xa0] sm:$0xff]  ;;  %v313_v11 = vld [vmem:[%s1371_s26 + $0xb0] sm:$0xff]  ;;  %310 = vst [vmem:[%s1376_s27 + $0x48] sm:$0xff] %v309_v9 }
  0x1a   : > { %312 = vst [vmem:[%s1376_s27 + $0x50] sm:$0xff] %v311_v10  ;;  %314 = vst [vmem:[%s1376_s27 + $0x58] sm:$0xff] %v313_v11  ;;  %v315_v12 = vld [vmem:[%s1371_s26 + $0xc0] sm:$0xff]  ;;  %v317_v13 = vld [vmem:[%s1371_s26 + $0xd0] sm:$0xff] }
  0x1b   : > { %v319_v14 = vld [vmem:[%s1371_s26 + $0xe0] sm:$0xff]  ;;  %316 = vst [vmem:[%s1376_s27 + $0x60] sm:$0xff] %v315_v12  ;;  %318 = vst [vmem:[%s1376_s27 + $0x68] sm:$0xff] %v317_v13  ;;  %v321_v15 = vld [vmem:[%s1371_s26 + $0xf0] sm:$0xff] }
  0x1c   : > { %320 = vst [vmem:[%s1376_s27 + $0x70] sm:$0xff] %v319_v14  ;;  %v323_v16 = vld [vmem:[%s1371_s26 + $0x100] sm:$0xff]  ;;  %v325_v17 = vld [vmem:[%s1371_s26 + $0x110] sm:$0xff]  ;;  %322 = vst [vmem:[%s1376_s27 + $0x78] sm:$0xff] %v321_v15 }
  0x1d   : > { %324 = vst [vmem:[%s1376_s27 + $0x80] sm:$0xff] %v323_v16  ;;  %326 = vst [vmem:[%s1376_s27 + $0x88] sm:$0xff] %v325_v17  ;;  %v327_v18 = vld [vmem:[%s1371_s26 + $0x120] sm:$0xff]  ;;  %v329_v19 = vld [vmem:[%s1371_s26 + $0x130] sm:$0xff] }
  0x1e   : > { %v331_v20 = vld [vmem:[%s1371_s26 + $0x140] sm:$0xff]  ;;  %328 = vst [vmem:[%s1376_s27 + $0x90] sm:$0xff] %v327_v18  ;;  %330 = vst [vmem:[%s1376_s27 + $0x98] sm:$0xff] %v329_v19  ;;  %v333_v21 = vld [vmem:[%s1371_s26 + $0x150] sm:$0xff] }
  0x1f   : > { %332 = vst [vmem:[%s1376_s27 + $0xa0] sm:$0xff] %v331_v20  ;;  %v335_v22 = vld [vmem:[%s1371_s26 + $0x160] sm:$0xff]  ;;  %v337_v23 = vld [vmem:[%s1371_s26 + $0x170] sm:$0xff]  ;;  %334 = vst [vmem:[%s1376_s27 + $0xa8] sm:$0xff] %v333_v21 }
  0x20   : > { %336 = vst [vmem:[%s1376_s27 + $0xb0] sm:$0xff] %v335_v22  ;;  %338 = vst [vmem:[%s1376_s27 + $0xb8] sm:$0xff] %v337_v23  ;;  %v339_v24 = vld [vmem:[%s1371_s26 + $0x180] sm:$0xff]  ;;  %v341_v25 = vld [vmem:[%s1371_s26 + $0x190] sm:$0xff] }
  0x21   : > { %v343_v26 = vld [vmem:[%s1371_s26 + $0x1a0] sm:$0xff]  ;;  %340 = vst [vmem:[%s1376_s27 + $0xc0] sm:$0xff] %v339_v24  ;;  %342 = vst [vmem:[%s1376_s27 + $0xc8] sm:$0xff] %v341_v25  ;;  %v345_v27 = vld [vmem:[%s1371_s26 + $0x1b0] sm:$0xff] }
  0x22   : > { %344 = vst [vmem:[%s1376_s27 + $0xd0] sm:$0xff] %v343_v26  ;;  %v347_v28 = vld [vmem:[%s1371_s26 + $0x1c0] sm:$0xff]  ;;  %v349_v29 = vld [vmem:[%s1371_s26 + $0x1d0] sm:$0xff]  ;;  %346 = vst [vmem:[%s1376_s27 + $0xd8] sm:$0xff] %v345_v27 }
  0x23   : > { %348 = vst [vmem:[%s1376_s27 + $0xe0] sm:$0xff] %v347_v28  ;;  %350 = vst [vmem:[%s1376_s27 + $0xe8] sm:$0xff] %v349_v29  ;;  %v351_v30 = vld [vmem:[%s1371_s26 + $0x1e0] sm:$0xff]  ;;  %v353_v31 = vld [vmem:[%s1371_s26 + $0x1f0] sm:$0xff] }
  0x24   : > { %v355_v32 = vld [vmem:[%s1371_s26 + $0x200] sm:$0xff]  ;;  %352 = vst [vmem:[%s1376_s27 + $0xf0] sm:$0xff] %v351_v30  ;;  %354 = vst [vmem:[%s1376_s27 + $0xf8] sm:$0xff] %v353_v31  ;;  %v357_v33 = vld [vmem:[%s1371_s26 + $0x210] sm:$0xff] }
  0x25   : > { %356 = vst [vmem:[%s1376_s27 + $0x100] sm:$0xff] %v355_v32  ;;  %v359_v34 = vld [vmem:[%s1371_s26 + $0x220] sm:$0xff]  ;;  %v361_v35 = vld [vmem:[%s1371_s26 + $0x230] sm:$0xff]  ;;  %358 = vst [vmem:[%s1376_s27 + $0x108] sm:$0xff] %v357_v33 }
  0x26   : > { %360 = vst [vmem:[%s1376_s27 + $0x110] sm:$0xff] %v359_v34  ;;  %362 = vst [vmem:[%s1376_s27 + $0x118] sm:$0xff] %v361_v35  ;;  %v363_v36 = vld [vmem:[%s1371_s26 + $0x240] sm:$0xff]  ;;  %v365_v37 = vld [vmem:[%s1371_s26 + $0x250] sm:$0xff] }
  0x27   : > { %v367_v38 = vld [vmem:[%s1371_s26 + $0x260] sm:$0xff]  ;;  %364 = vst [vmem:[%s1376_s27 + $0x120] sm:$0xff] %v363_v36  ;;  %366 = vst [vmem:[%s1376_s27 + $0x128] sm:$0xff] %v365_v37  ;;  %v369_v39 = vld [vmem:[%s1371_s26 + $0x270] sm:$0xff] }
  0x28   : > { %368 = vst [vmem:[%s1376_s27 + $0x130] sm:$0xff] %v367_v38  ;;  %v371_v40 = vld [vmem:[%s1371_s26 + $0x280] sm:$0xff]  ;;  %v373_v41 = vld [vmem:[%s1371_s26 + $0x290] sm:$0xff]  ;;  %370 = vst [vmem:[%s1376_s27 + $0x138] sm:$0xff] %v369_v39 }
  0x29   : > { %372 = vst [vmem:[%s1376_s27 + $0x140] sm:$0xff] %v371_v40  ;;  %374 = vst [vmem:[%s1376_s27 + $0x148] sm:$0xff] %v373_v41  ;;  %v375_v42 = vld [vmem:[%s1371_s26 + $0x2a0] sm:$0xff]  ;;  %v377_v43 = vld [vmem:[%s1371_s26 + $0x2b0] sm:$0xff] }
  0x2a   : > { %v379_v44 = vld [vmem:[%s1371_s26 + $0x2c0] sm:$0xff]  ;;  %376 = vst [vmem:[%s1376_s27 + $0x150] sm:$0xff] %v375_v42  ;;  %378 = vst [vmem:[%s1376_s27 + $0x158] sm:$0xff] %v377_v43  ;;  %v381_v45 = vld [vmem:[%s1371_s26 + $0x2d0] sm:$0xff] }
  0x2b   : > { %380 = vst [vmem:[%s1376_s27 + $0x160] sm:$0xff] %v379_v44  ;;  %v383_v46 = vld [vmem:[%s1371_s26 + $0x2e0] sm:$0xff]  ;;  %v385_v47 = vld [vmem:[%s1371_s26 + $0x2f0] sm:$0xff]  ;;  %382 = vst [vmem:[%s1376_s27 + $0x168] sm:$0xff] %v381_v45 }
  0x2c   : > { %384 = vst [vmem:[%s1376_s27 + $0x170] sm:$0xff] %v383_v46  ;;  %386 = vst [vmem:[%s1376_s27 + $0x178] sm:$0xff] %v385_v47  ;;  %v387_v48 = vld [vmem:[%s1371_s26 + $0x300] sm:$0xff]  ;;  %v389_v49 = vld [vmem:[%s1371_s26 + $0x310] sm:$0xff] }
  0x2d   : > { %v391_v50 = vld [vmem:[%s1371_s26 + $0x320] sm:$0xff]  ;;  %388 = vst [vmem:[%s1376_s27 + $0x180] sm:$0xff] %v387_v48  ;;  %390 = vst [vmem:[%s1376_s27 + $0x188] sm:$0xff] %v389_v49  ;;  %v393_v51 = vld [vmem:[%s1371_s26 + $0x330] sm:$0xff] }
  0x2e   : > { %392 = vst [vmem:[%s1376_s27 + $0x190] sm:$0xff] %v391_v50  ;;  %v395_v52 = vld [vmem:[%s1371_s26 + $0x340] sm:$0xff]  ;;  %v397_v53 = vld [vmem:[%s1371_s26 + $0x350] sm:$0xff]  ;;  %394 = vst [vmem:[%s1376_s27 + $0x198] sm:$0xff] %v393_v51 }
  0x2f   : > { %396 = vst [vmem:[%s1376_s27 + $0x1a0] sm:$0xff] %v395_v52  ;;  %398 = vst [vmem:[%s1376_s27 + $0x1a8] sm:$0xff] %v397_v53  ;;  %v399_v54 = vld [vmem:[%s1371_s26 + $0x360] sm:$0xff]  ;;  %v401_v55 = vld [vmem:[%s1371_s26 + $0x370] sm:$0xff] }
  0x30   : > { %v403_v56 = vld [vmem:[%s1371_s26 + $0x380] sm:$0xff]  ;;  %400 = vst [vmem:[%s1376_s27 + $0x1b0] sm:$0xff] %v399_v54  ;;  %402 = vst [vmem:[%s1376_s27 + $0x1b8] sm:$0xff] %v401_v55  ;;  %v405_v57 = vld [vmem:[%s1371_s26 + $0x390] sm:$0xff] }
  0x31   : > { %404 = vst [vmem:[%s1376_s27 + $0x1c0] sm:$0xff] %v403_v56  ;;  %v407_v58 = vld [vmem:[%s1371_s26 + $0x3a0] sm:$0xff]  ;;  %v409_v59 = vld [vmem:[%s1371_s26 + $0x3b0] sm:$0xff]  ;;  %406 = vst [vmem:[%s1376_s27 + $0x1c8] sm:$0xff] %v405_v57 }
  0x32   : > { %408 = vst [vmem:[%s1376_s27 + $0x1d0] sm:$0xff] %v407_v58  ;;  %410 = vst [vmem:[%s1376_s27 + $0x1d8] sm:$0xff] %v409_v59  ;;  %v411_v60 = vld [vmem:[%s1371_s26 + $0x3c0] sm:$0xff]  ;;  %v413_v61 = vld [vmem:[%s1371_s26 + $0x3d0] sm:$0xff] }
  0x33   : > { %v415_v62 = vld [vmem:[%s1371_s26 + $0x3e0] sm:$0xff]  ;;  %412 = vst [vmem:[%s1376_s27 + $0x1e0] sm:$0xff] %v411_v60  ;;  %414 = vst [vmem:[%s1376_s27 + $0x1e8] sm:$0xff] %v413_v61  ;;  %v417_v63 = vld [vmem:[%s1371_s26 + $0x3f0] sm:$0xff] }
  0x34   : > { %416 = vst [vmem:[%s1376_s27 + $0x1f0] sm:$0xff] %v415_v62  ;;  %418 = vst [vmem:[%s1376_s27 + $0x1f8] sm:$0xff] %v417_v63 }
  0x35 PF: > { %p1064_p7 = scmp.ge.s32.totalorder %s1308_s14, 1  ;;  %p423_p8 = scmp.lt.s32.totalorder %s1308_s14, 3 }
  0x37   : > { %p424_p9 = pnand %p1064_p7, %p423_p8 }
  0x38   : > { %s430_s28 = sand.u32 (!%p424_p9), 1, %s1300_s12   ;;  %v1274_v0 = vld [vmem:[%s1611_s0 + $0x4] ss:$16 sps:$4 sm:$0xff] (!%p424_p9)   ;;  %v1310_v1 = vmov (!%p424_p9), 0   ;;  %v1277_v2 = vld [vmem:[%s1611_s0 + $0xc] ss:$16 sps:$4 sm:$0xff] (!%p424_p9)  }
  0x39   : > { %427 = sbr.rel (%p424_p9) target bundleno = 363 (0x16b), region = 66  ;;  %s1065_s29 = sshll.u32 (!%p424_p9), %s430_s28, 9  ;;  %1175 = vset.pattern.permute.xlu0 (!%p424_p9), %v1310_v1  ;;  %v522_v3 = vld [vmem:[%s1613_s2] sm:$0xff] (!%p424_p9)  ;;  %906 = vmatprep.mubr.bf16.mxu1 (!%p424_p9), %v1274_v0  ;;  %v523_v50 = vld [vmem:[%s1613_s2 + $0x8] sm:$0xff] (!%p424_p9) }
  0x3a   : > { %s1517_s9 = scalar_lea.vmem (!%p424_p9), [#allocation2], %s1065_s29  ;;  %526 = vperm.xlu0 (!%p424_p9), %1175, %v522_v3   ;;  %949 = vmatprep.mubr.bf16.mxu0 (!%p424_p9), %v1277_v2  ;;  %s1066_s23 = sshll.u32 (!%p424_p9), %s430_s28, 5 }
  0x3b   : > { %v1176_v4 = vld [vmem:[%s1517_s9 + $0x4] ss:$8 sps:$4 sm:$0xff] (!%p424_p9)   ;;  %v1180_v6 = vld [vmem:[%s1517_s9] ss:$8 sps:$4 sm:$0xff] (!%p424_p9)   ;;  %v1182_v8 = vld [vmem:[%s1517_s9 + $0x14] ss:$8 sps:$4 sm:$0xff] (!%p424_p9)  }
  0x3c   : > { %v1178_v5 = vld [vmem:[%s1517_s9 + $0x104] ss:$8 sps:$4 sm:$0xff] (!%p424_p9)   ;;  %874 = vmatprep.subr.bf16.mxu1 (!%p424_p9), %v1176_v4  ;;  %v1181_v7 = vld [vmem:[%s1517_s9 + $0x100] ss:$8 sps:$4 sm:$0xff] (!%p424_p9)   ;;  %v1184_v9 = vld [vmem:[%s1517_s9 + $0x114] ss:$8 sps:$4 sm:$0xff] (!%p424_p9)  }
  0x3d   : > { %917 = vmatprep.subr.bf16.mxu0 (!%p424_p9), %v1178_v5  ;;  %875 = vmatpush1.bf16.msra.mxu1 (!%p424_p9), %v1180_v6  ;;  %v1186_v10 = vld [vmem:[%s1517_s9 + $0x10] ss:$8 sps:$4 sm:$0xff] (!%p424_p9)   ;;  %v1188_v12 = vld [vmem:[%s1517_s9 + $0x24] ss:$8 sps:$4 sm:$0xff] (!%p424_p9)   ;;  %v1192_v14 = vld [vmem:[%s1517_s9 + $0x20] ss:$8 sps:$4 sm:$0xff] (!%p424_p9)  }
  0x3e   : > { %918 = vmatpush1.bf16.msra.mxu0 (!%p424_p9), %v1181_v7  ;;  %876 = vmatprep.subr.bf16.mxu1 (!%p424_p9), %v1182_v8  ;;  %v1187_v11 = vld [vmem:[%s1517_s9 + $0x110] ss:$8 sps:$4 sm:$0xff] (!%p424_p9)   ;;  %v1190_v13 = vld [vmem:[%s1517_s9 + $0x124] ss:$8 sps:$4 sm:$0xff] (!%p424_p9)   ;;  %v1193_v15 = vld [vmem:[%s1517_s9 + $0x120] ss:$8 sps:$4 sm:$0xff] (!%p424_p9)  }
  0x3f   : > { %919 = vmatprep.subr.bf16.mxu0 (!%p424_p9), %v1184_v9  ;;  %v1194_v16 = vld [vmem:[%s1517_s9 + $0x34] ss:$8 sps:$4 sm:$0xff] (!%p424_p9)   ;;  %v1198_v18 = vld [vmem:[%s1517_s9 + $0x30] ss:$8 sps:$4 sm:$0xff] (!%p424_p9)   ;;  %v1200_v20 = vld [vmem:[%s1517_s9 + $0x44] ss:$8 sps:$4 sm:$0xff] (!%p424_p9)   ;;  %531 = vperm.xlu0 (!%p424_p9), %1175, %v523_v50  }
  0x40   : > { %v1196_v17 = vld [vmem:[%s1517_s9 + $0x134] ss:$8 sps:$4 sm:$0xff]   ;;  %v1199_v19 = vld [vmem:[%s1517_s9 + $0x130] ss:$8 sps:$4 sm:$0xff]   ;;  %v1202_v21 = vld [vmem:[%s1517_s9 + $0x144] ss:$8 sps:$4 sm:$0xff]  }
  0x41   : > { %877 = vmatpush1.bf16.msra.mxu1 %v1186_v10  ;;  %v1204_v22 = vld [vmem:[%s1517_s9 + $0x40] ss:$8 sps:$4 sm:$0xff]   ;;  %v1206_v24 = vld [vmem:[%s1517_s9 + $0x54] ss:$8 sps:$4 sm:$0xff]   ;;  %v1210_v26 = vld [vmem:[%s1517_s9 + $0x50] ss:$8 sps:$4 sm:$0xff]  }
  0x42   : > { %920 = vmatpush1.bf16.msra.mxu0 %v1187_v11  ;;  %878 = vmatprep.subr.bf16.mxu1 %v1188_v12  ;;  %v1205_v23 = vld [vmem:[%s1517_s9 + $0x140] ss:$8 sps:$4 sm:$0xff]   ;;  %v1208_v25 = vld [vmem:[%s1517_s9 + $0x154] ss:$8 sps:$4 sm:$0xff]   ;;  %v1211_v27 = vld [vmem:[%s1517_s9 + $0x150] ss:$8 sps:$4 sm:$0xff]  }
  0x43   : > { %921 = vmatprep.subr.bf16.mxu0 %v1190_v13  ;;  %v1212_v28 = vld [vmem:[%s1517_s9 + $0x64] ss:$8 sps:$4 sm:$0xff]   ;;  %v1216_v30 = vld [vmem:[%s1517_s9 + $0x60] ss:$8 sps:$4 sm:$0xff]   ;;  %v1218_v32 = vld [vmem:[%s1517_s9 + $0x74] ss:$8 sps:$4 sm:$0xff]  }
  0x44   : > { %v1214_v29 = vld [vmem:[%s1517_s9 + $0x164] ss:$8 sps:$4 sm:$0xff]   ;;  %v1217_v31 = vld [vmem:[%s1517_s9 + $0x160] ss:$8 sps:$4 sm:$0xff]   ;;  %v1220_v33 = vld [vmem:[%s1517_s9 + $0x174] ss:$8 sps:$4 sm:$0xff]  }
  0x45   : > { %879 = vmatpush1.bf16.msra.mxu1 %v1192_v14  ;;  %v1222_v34 = vld [vmem:[%s1517_s9 + $0x70] ss:$8 sps:$4 sm:$0xff]   ;;  %v1224_v36 = vld [vmem:[%s1517_s9 + $0x84] ss:$8 sps:$4 sm:$0xff]   ;;  %v1228_v38 = vld [vmem:[%s1517_s9 + $0x80] ss:$8 sps:$4 sm:$0xff]  }
  0x46   : > { %922 = vmatpush1.bf16.msra.mxu0 %v1193_v15  ;;  %880 = vmatprep.subr.bf16.mxu1 %v1194_v16  ;;  %v1223_v35 = vld [vmem:[%s1517_s9 + $0x170] ss:$8 sps:$4 sm:$0xff]   ;;  %v1226_v37 = vld [vmem:[%s1517_s9 + $0x184] ss:$8 sps:$4 sm:$0xff]   ;;  %v1229_v39 = vld [vmem:[%s1517_s9 + $0x180] ss:$8 sps:$4 sm:$0xff]  }
  0x47   : > { %923 = vmatprep.subr.bf16.mxu0 %v1196_v17  ;;  %v1230_v40 = vld [vmem:[%s1517_s9 + $0x94] ss:$8 sps:$4 sm:$0xff]   ;;  %v1234_v42 = vld [vmem:[%s1517_s9 + $0x90] ss:$8 sps:$4 sm:$0xff]   ;;  %v1236_v44 = vld [vmem:[%s1517_s9 + $0xa4] ss:$8 sps:$4 sm:$0xff]  }
  0x48   : > { %v1232_v41 = vld [vmem:[%s1517_s9 + $0x194] ss:$8 sps:$4 sm:$0xff]   ;;  %v1235_v43 = vld [vmem:[%s1517_s9 + $0x190] ss:$8 sps:$4 sm:$0xff]   ;;  %v1238_v45 = vld [vmem:[%s1517_s9 + $0x1a4] ss:$8 sps:$4 sm:$0xff]  }
  0x49   : > { %881 = vmatpush1.bf16.msra.mxu1 %v1198_v18  ;;  %v1240_v46 = vld [vmem:[%s1517_s9 + $0xa0] ss:$8 sps:$4 sm:$0xff]   ;;  %v1242_v48 = vld [vmem:[%s1517_s9 + $0xb4] ss:$8 sps:$4 sm:$0xff]   ;;  %v1246_v51 = vld [vmem:[%s1517_s9 + $0xb0] ss:$8 sps:$4 sm:$0xff]  }
  0x4a   : > { %924 = vmatpush1.bf16.msra.mxu0 %v1199_v19  ;;  %882 = vmatprep.subr.bf16.mxu1 %v1200_v20  ;;  %v1241_v47 = vld [vmem:[%s1517_s9 + $0x1a0] ss:$8 sps:$4 sm:$0xff]   ;;  %v1244_v49 = vld [vmem:[%s1517_s9 + $0x1b4] ss:$8 sps:$4 sm:$0xff]   ;;  %v1247_v52 = vld [vmem:[%s1517_s9 + $0x1b0] ss:$8 sps:$4 sm:$0xff]  }
  0x4b   : > { %925 = vmatprep.subr.bf16.mxu0 %v1202_v21  ;;  %v1248_v53 = vld [vmem:[%s1517_s9 + $0xc4] ss:$8 sps:$4 sm:$0xff]   ;;  %v1252_v55 = vld [vmem:[%s1517_s9 + $0xc0] ss:$8 sps:$4 sm:$0xff]   ;;  %v1254_v57 = vld [vmem:[%s1517_s9 + $0xd4] ss:$8 sps:$4 sm:$0xff]  }
  0x4c   : > { %v1250_v54 = vld [vmem:[%s1517_s9 + $0x1c4] ss:$8 sps:$4 sm:$0xff]   ;;  %v1253_v56 = vld [vmem:[%s1517_s9 + $0x1c0] ss:$8 sps:$4 sm:$0xff]   ;;  %v1256_v58 = vld [vmem:[%s1517_s9 + $0x1d4] ss:$8 sps:$4 sm:$0xff]  }
  0x4d   : > { %883 = vmatpush1.bf16.msra.mxu1 %v1204_v22  ;;  %v1258_v59 = vld [vmem:[%s1517_s9 + $0xd0] ss:$8 sps:$4 sm:$0xff]   ;;  %v1260_v61 = vld [vmem:[%s1517_s9 + $0xe4] ss:$8 sps:$4 sm:$0xff]   ;;  %v1264_v63 = vld [vmem:[%s1517_s9 + $0xe0] ss:$8 sps:$4 sm:$0xff]  }
  0x4e   : > { %926 = vmatpush1.bf16.msra.mxu0 %v1205_v23  ;;  %884 = vmatprep.subr.bf16.mxu1 %v1206_v24  ;;  %v1259_v60 = vld [vmem:[%s1517_s9 + $0x1d0] ss:$8 sps:$4 sm:$0xff]   ;;  %v1262_v62 = vld [vmem:[%s1517_s9 + $0x1e4] ss:$8 sps:$4 sm:$0xff]   ;;  %v1265_v0 = vld [vmem:[%s1517_s9 + $0x1e0] ss:$8 sps:$4 sm:$0xff]  }
  0x4f   : > { %927 = vmatprep.subr.bf16.mxu0 %v1208_v25  ;;  %v1266_v1 = vld [vmem:[%s1517_s9 + $0xf4] ss:$8 sps:$4 sm:$0xff]   ;;  %v1270_v3 = vld [vmem:[%s1517_s9 + $0xf0] ss:$8 sps:$4 sm:$0xff]   ;;  %s451_s24 = scalar_lea.vmem [#allocation3], %s1066_s23  ;;  %s1141_s25 = sshll.u32 (%p1361_p5), %s1057_s15, 4 }
  0x50   : > { %v1268_v2 = vld [vmem:[%s1517_s9 + $0x1f4] ss:$8 sps:$4 sm:$0xff]   ;;  %v1271_v4 = vld [vmem:[%s1517_s9 + $0x1f0] ss:$8 sps:$4 sm:$0xff]   ;;  %s977_s27 = scalar_lea.vmem (%p1361_p5), %s1614_s3, %s1141_s25 }
  0x51   : > { %885 = vmatpush1.bf16.msra.mxu1 %v1210_v26  ;;  %v1272_v5 = vld [vmem:[%s1611_s0] ss:$16 sps:$4 sm:$0xff]   ;;  %v1275_v6 = vld [vmem:[%s1611_s0 + $0x8] ss:$16 sps:$4 sm:$0xff]  }
  0x52   : > { %928 = vmatpush1.bf16.msra.mxu0 %v1211_v27  ;;  %886 = vmatprep.subr.bf16.mxu1 %v1212_v28 }
  0x53   : > { %929 = vmatprep.subr.bf16.mxu0 %v1214_v29 }
  0x55   : > { %887 = vmatpush1.bf16.msra.mxu1 %v1216_v30 }
  0x56   : > { %930 = vmatpush1.bf16.msra.mxu0 %v1217_v31  ;;  %888 = vmatprep.subr.bf16.mxu1 %v1218_v32 }
  0x57   : > { %931 = vmatprep.subr.bf16.mxu0 %v1220_v33 }
  0x59   : > { %889 = vmatpush1.bf16.msra.mxu1 %v1222_v34 }
  0x5a   : > { %932 = vmatpush1.bf16.msra.mxu0 %v1223_v35  ;;  %890 = vmatprep.subr.bf16.mxu1 %v1224_v36 }
  0x5b   : > { %933 = vmatprep.subr.bf16.mxu0 %v1226_v37 }
  0x5d   : > { %891 = vmatpush1.bf16.msra.mxu1 %v1228_v38 }
  0x5e   : > { %934 = vmatpush1.bf16.msra.mxu0 %v1229_v39  ;;  %892 = vmatprep.subr.bf16.mxu1 %v1230_v40 }
  0x5f   : > { %935 = vmatprep.subr.bf16.mxu0 %v1232_v41 }
  0x61   : > { %893 = vmatpush1.bf16.msra.mxu1 %v1234_v42 }
  0x62   : > { %936 = vmatpush1.bf16.msra.mxu0 %v1235_v43  ;;  %894 = vmatprep.subr.bf16.mxu1 %v1236_v44 }
  0x63   : > { %937 = vmatprep.subr.bf16.mxu0 %v1238_v45 }
  0x65   : > { %895 = vmatpush1.bf16.msra.mxu1 %v1240_v46 }
  0x66   : > { %938 = vmatpush1.bf16.msra.mxu0 %v1241_v47  ;;  %896 = vmatprep.subr.bf16.mxu1 %v1242_v48 }
  0x67   : > { %939 = vmatprep.subr.bf16.mxu0 %v1244_v49 }
  0x69   : > { %897 = vmatpush1.bf16.msra.mxu1 %v1246_v51 }
  0x6a   : > { %940 = vmatpush1.bf16.msra.mxu0 %v1247_v52  ;;  %898 = vmatprep.subr.bf16.mxu1 %v1248_v53 }
  0x6b   : > { %941 = vmatprep.subr.bf16.mxu0 %v1250_v54 }
  0x6d   : > { %899 = vmatpush1.bf16.msra.mxu1 %v1252_v55 }
  0x6e   : > { %942 = vmatpush1.bf16.msra.mxu0 %v1253_v56  ;;  %900 = vmatprep.subr.bf16.mxu1 %v1254_v57 }
  0x6f   : > { %943 = vmatprep.subr.bf16.mxu0 %v1256_v58 }
  0x71   : > { %901 = vmatpush1.bf16.msra.mxu1 %v1258_v59 }
  0x72   : > { %944 = vmatpush1.bf16.msra.mxu0 %v1259_v60  ;;  %902 = vmatprep.subr.bf16.mxu1 %v1260_v61 }
  0x73   : > { %945 = vmatprep.subr.bf16.mxu0 %v1262_v62 }
  0x75   : > { %903 = vmatpush1.bf16.msra.mxu1 %v1264_v63 }
  0x76   : > { %946 = vmatpush1.bf16.msra.mxu0 %v1265_v0  ;;  %904 = vmatprep.subr.bf16.mxu1 %v1266_v1 }
  0x77   : > { %947 = vmatprep.subr.bf16.mxu0 %v1268_v2 }
  0x79   : > { %905 = vmatpush1.bf16.msra.mxu1 %v1270_v3 }
  0x7a   : > { %948 = vmatpush1.bf16.msra.mxu0 %v1271_v4 }
  0x7c   : > { %907 = vmatmul.mubr.bf16.vlgmr.msra.gmra.mrb[0].mxu1 %v1272_v5 }
  0x7d   : > { %950 = vmatmul.mubr.bf16.vlgmr.msra.gmra.mrb[0].mxu0 %v1275_v6 }
  0xb9   : > { %v527_v7 = vpop.permute.xlu0 %526 }
  0xbe   : > { %v532_v8 = vpop.permute.xlu0 %531 }
 0x14f   : > { %v908_v9 = vpop.f32.mrb[0].mxu1 }
 0x150   : > { %v951_v10 = vpop.f32.mrb[0].mxu0  ;;  %v909_v11 = vadd.f32 %v908_v9, %v527_v7  ;;  %v910_v12 = vpop.f32.mrb[1].mxu1 }
 0x151   : > { %v953_v13 = vpop.f32.mrb[1].mxu0  ;;  %v911_v14 = vadd.f32 %v910_v12, %v527_v7  ;;  %v912_v15 = vpop.f32.mrb[2].mxu1 }
 0x152   : > { %v955_v16 = vpop.f32.mrb[2].mxu0  ;;  %v952_v17 = vadd.f32 %v951_v10, %v909_v11  ;;  %v913_v18 = vadd.f32 %v912_v15, %v532_v8  ;;  %v914_v19 = vpop.f32.mrb[3].mxu1 }
 0x153   : > { %v957_v20 = vpop.f32.mrb[3].mxu0  ;;  %v954_v21 = vadd.f32 %v953_v13, %v911_v14  ;;  %v915_v22 = vadd.f32 %v914_v19, %v532_v8 }
 0x154   : > { %1278 = vtanh.f32 %v952_v17  ;;  %v956_v23 = vadd.f32 %v955_v16, %v913_v18 }
 0x155   : > { %1280 = vtanh.f32 %v954_v21  ;;  %v958_v24 = vadd.f32 %v957_v20, %v915_v22 }
 0x156   : > { %1282 = vtanh.f32 %v956_v23 }
 0x157   : > { %1284 = vtanh.f32 %v958_v24 }
 0x15c   : > { %974 = sbr.rel (!%p1361_p5) target bundleno = 363 (0x16b), region = 74 }
 0x15e   : > { %v1279_v25 = vpop.eup %1278 }
 0x15f   : > { %v1281_v26 = vpop.eup %1280  ;;  %964 = vst [vmem:[%s451_s24] sm:$0xff] %v1279_v25 }
 0x160   : > { %v1283_v27 = vpop.eup %1282  ;;  %965 = vst [vmem:[%s451_s24 + $0x8] sm:$0xff] %v1281_v26 }
 0x161   : > { %v1285_v28 = vpop.eup %1284  ;;  %966 = vst [vmem:[%s451_s24 + $0x10] sm:$0xff] %v1283_v27 }
 0x162   : > { %967 = vst [vmem:[%s451_s24 + $0x18] sm:$0xff] %v1285_v28 }
 0x166   : > { %v990_v29 = vld [vmem:[%s451_s24] sm:$0xff] }
 0x167   : > { %v992_v30 = vld [vmem:[%s451_s24 + $0x8] sm:$0xff]  ;;  %991 = vst [vmem:[%s977_s27] sm:$0xff] %v990_v29 }
 0x168   : > { %v994_v31 = vld [vmem:[%s451_s24 + $0x10] sm:$0xff]  ;;  %993 = vst [vmem:[%s977_s27 + $0x8] sm:$0xff] %v992_v30 }
 0x169   : > { %v996_v32 = vld [vmem:[%s451_s24 + $0x18] sm:$0xff]  ;;  %995 = vst [vmem:[%s977_s27 + $0x20] sm:$0xff] %v994_v31 }
 0x16a   : > { %997 = vst [vmem:[%s977_s27 + $0x28] sm:$0xff] %v996_v32 }
 0x16b PF: > { %p10_p10 = scmp.ge.s32.totalorder %s1348_s16, 4   ;;  %s1616_s12 = smov %s1304_s13 }
 0x16c   : > { %s1617_s13 = smov %s1359_s19  ;;  %s1618_s14 = smov %s1348_s16 }
 0x16d   :  { %12 = sbr.rel (!%p10_p10) target bundleno = 2 (0x2), region = 128 }

</bundles_post_ra>
